<compile_context>
chip_gen: v7x
topology: tpu7x:2x2x1
jax: 0.10.0
libtpu: 0.0.40
codegen_flags: <defaults>
</compile_context>

<pallas_src>
import numpy as np
import jax
import jax.numpy as jnp
from jax.experimental import pallas as pl
from jax.experimental.pallas import tpu as pltpu

HIDDEN = 32
FC1 = 64
NCLS = 2
GATE_PAD = 128   # each GRU gate (r|z|n) occupies its own 128-lane block
SUBLANE = 8      # batch is padded to a multiple of the sublane count


def make_gru_kernel(T, B_pad):
    GP = GATE_PAD

    def gru_kernel(x_ref, wi_ref, wh_ref, bi_ref, bhn_ref, wd_ref, bd_ref,
                   out_ref):
        # ---- hoisted input projection: ONE (T*B_pad, F) @ (F, 3*GP) matmul ----
        # bi already folds b_ir+b_hr | b_iz+b_hz | b_in (gate order r|z|n);
        # each gate sits in its own 128-lane block (lanes >= H are zero).
        gi = (jnp.dot(x_ref[...], wi_ref[...],
                      preferred_element_type=jnp.float32)
              + bi_ref[...])                                   # (T*B_pad, 3*GP)

        wh = wh_ref[...]                                       # (GP, 3*GP), hoisted
        # hoist the bhn broadcast out of the unrolled loop (no CSE in JAX)
        bhn_b = jnp.broadcast_to(bhn_ref[...], (B_pad, GP))    # (B_pad, GP)

        # ---- GRU recurrence, fully unrolled (T is small) ----
        # h is lane-padded to GP; padded lanes stay exactly 0 because the
        # matching wi/wh/bi columns are 0.  With B_pad = 8 every per-step slice
        # of gi starts on a sublane-tile boundary (whole-tile read, no relayout).
        h = jnp.zeros((B_pad, GP), jnp.float32)
        for t in range(T):
            gi_t = gi[t * B_pad:(t + 1) * B_pad, :]            # (B_pad, 3*GP)
            gh = jnp.dot(h, wh, preferred_element_type=jnp.float32)  # (B_pad, 3*GP)
            r = jax.nn.sigmoid(gi_t[:, 0:GP] + gh[:, 0:GP])
            z = jax.nn.sigmoid(gi_t[:, GP:2 * GP] + gh[:, GP:2 * GP])
            n = jnp.tanh(gi_t[:, 2 * GP:3 * GP]
                         + r * (gh[:, 2 * GP:3 * GP] + bhn_b))
            h = (1.0 - z) * n + z * h

        # ---- epilogue: folded fc1∘fc2 + 2-class softmax as lane-wise sigmoid ----
        #   softmax([y0, y1]) == [sigmoid(y0 - y1), sigmoid(y1 - y0)]
        # wd/bd are the pre-folded logit-difference weights, so this is one
        # (B_pad, GP) @ (GP, 2) matmul plus a sigmoid; no cross-lane reductions.
        d = (jnp.dot(h, wd_ref[...], preferred_element_type=jnp.float32)
             + bd_ref[...])                                    # (B_pad, 2)
        out_ref[...] = jax.nn.sigmoid(d).astype(out_ref.dtype)

    return gru_kernel


def pack_params(w_ih, w_hh, b_ih, b_hh, fc1_w, fc1_b, fc2_w, fc2_b):
    """Repack PyTorch-layout GRU/FC weights into the kernel's padded layout."""
    H, GP = HIDDEN, GATE_PAD

    def lane_pad_gates(m):
        # (rows, 3H) -> (rows, 3*GP): gate g occupies lanes [g*GP, g*GP + H)
        rows = m.shape[0]
        out = jnp.zeros((rows, 3 * GP), jnp.float32)
        for g in range(3):
            out = out.at[:, g * GP:g * GP + H].set(m[:, g * H:(g + 1) * H])
        return out

    wi = lane_pad_gates(w_ih.T)                                # (F, 3*GP)
    wh = jnp.zeros((GP, 3 * GP), jnp.float32).at[:H, :].set(
        lane_pad_gates(w_hh.T))                                # (GP, 3*GP)

    bi_fused = jnp.concatenate([
        b_ih[0 * H:1 * H] + b_hh[0 * H:1 * H],                 # b_ir + b_hr
        b_ih[1 * H:2 * H] + b_hh[1 * H:2 * H],                 # b_iz + b_hz
        b_ih[2 * H:3 * H],                                     # b_in
    ])
    bi = lane_pad_gates(bi_fused.reshape(1, 3 * H))            # (1, 3*GP)
    bhn = jnp.zeros((1, GP), jnp.float32).at[0, :H].set(
        b_hh[2 * H:3 * H])                                     # (1, GP)

    # fc1 -> fc2 is purely linear (no activation in between), so fold it:
    #   y = h @ (W1^T W2^T) + (b1 @ W2^T + b2)
    # and express the 2-class softmax as the two logit differences.
    w12 = fc1_w.T @ fc2_w.T                                    # (H, 2)
    b12 = fc1_b @ fc2_w.T + fc2_b                              # (2,)
    wdiff = jnp.stack([w12[:, 0] - w12[:, 1],
                       w12[:, 1] - w12[:, 0]], axis=1)         # (H, 2)
    bdiff = jnp.stack([b12[0] - b12[1],
                       b12[1] - b12[0]]).reshape(1, NCLS)      # (1, 2)
    wd = jnp.zeros((GP, NCLS), jnp.float32).at[:H, :].set(wdiff)

    return (wi, wh, bi, bhn, wd, bdiff)


def gru_model_forward(x_btf, params):
    """x_btf: (B, T, F) float32 (PyTorch batch_first layout)."""
    B, T, F = x_btf.shape
    B_pad = max(SUBLANE, ((B + SUBLANE - 1) // SUBLANE) * SUBLANE)

    # time-major + sublane-pad the batch so each step is an (8,128)-aligned tile
    x_tbf = jnp.transpose(x_btf, (1, 0, 2))                    # (T, B, F)
    x_pad = jnp.pad(x_tbf, ((0, 0), (0, B_pad - B), (0, 0)))   # (T, B_pad, F)
    x_flat = x_pad.reshape(T * B_pad, F)

    wi, wh, bi, bhn, wd, bd = params
    operands = (x_flat, wi, wh, bi, bhn, wd, bd)

    # No grid: single invocation, every operand lives whole in VMEM
    # (total footprint is a few hundred KB, far below any VMEM limit;
    #  a scaled variant would chunk the time axis and budget for v7x's 64 MiB).
    out = pl.pallas_call(
        make_gru_kernel(T, B_pad),
        out_shape=jax.ShapeDtypeStruct((B_pad, NCLS), jnp.float32),
        in_specs=[pl.BlockSpec(memory_space=pltpu.MemorySpace.VMEM)
                  for _ in operands],
        out_specs=pl.BlockSpec(memory_space=pltpu.MemorySpace.VMEM),
    )(*operands)
    return out[:B]


def reference_forward(x, w_ih, w_hh, b_ih, b_hh, fc1_w, fc1_b, fc2_w, fc2_b):
    """Pure-JAX reference mirroring torch nn.GRU + fc1 + fc2 + softmax."""
    B, T, F = x.shape
    h = jnp.zeros((B, HIDDEN), jnp.float32)
    for t in range(T):
        gi = x[:, t, :] @ w_ih.T + b_ih
        gh = h @ w_hh.T + b_hh
        i_r, i_z, i_n = jnp.split(gi, 3, axis=1)
        h_r, h_z, h_n = jnp.split(gh, 3, axis=1)
        r = jax.nn.sigmoid(i_r + h_r)
        z = jax.nn.sigmoid(i_z + h_z)
        n = jnp.tanh(i_n + r * h_n)
        h = (1.0 - z) * n + z * h
    y = h @ fc1_w.T + fc1_b
    y = y @ fc2_w.T + fc2_b
    return jax.nn.softmax(y, axis=1)


if __name__ == "__main__":
    # Small shapes consistent with the module: batch=4, seq=8, features=16.
    B, T, F = 4, 8, 16

    key = jax.random.PRNGKey(0)
    ks = jax.random.split(key, 10)

    # Deterministic synthetic parameters (PyTorch-style uniform init bounds).
    kg = 1.0 / np.sqrt(HIDDEN)
    w_ih = jax.random.uniform(ks[0], (3 * HIDDEN, F), jnp.float32, -kg, kg)
    w_hh = jax.random.uniform(ks[1], (3 * HIDDEN, HIDDEN), jnp.float32, -kg, kg)
    b_ih = jax.random.uniform(ks[2], (3 * HIDDEN,), jnp.float32, -kg, kg)
    b_hh = jax.random.uniform(ks[3], (3 * HIDDEN,), jnp.float32, -kg, kg)

    k1 = 1.0 / np.sqrt(HIDDEN)
    fc1_w = jax.random.uniform(ks[4], (FC1, HIDDEN), jnp.float32, -k1, k1)
    fc1_b = jax.random.uniform(ks[5], (FC1,), jnp.float32, -k1, k1)
    k2 = 1.0 / np.sqrt(FC1)
    fc2_w = jax.random.uniform(ks[6], (NCLS, FC1), jnp.float32, -k2, k2)
    fc2_b = jax.random.uniform(ks[7], (NCLS,), jnp.float32, -k2, k2)

    x = jax.random.normal(ks[8], (B, T, F), jnp.float32)

    params = pack_params(w_ih, w_hh, b_ih, b_hh, fc1_w, fc1_b, fc2_w, fc2_b)

    out = jax.block_until_ready(gru_model_forward(x, params))

    ref = reference_forward(x, w_ih, w_hh, b_ih, b_hh,
                            fc1_w, fc1_b, fc2_w, fc2_b)
    np.testing.assert_allclose(np.asarray(out), np.asarray(ref),
                               rtol=1e-5, atol=1e-5)

    print("KERNEL_OK")
</pallas_src>

<mosaic_0001>
module attributes {stable_mosaic.version = 11 : i64} {
  func.func @gru_kernel(%arg0: memref<64x16xf32, #tpu.memory_space<vmem>>, %arg1: memref<16x384xf32, #tpu.memory_space<vmem>>, %arg2: memref<128x384xf32, #tpu.memory_space<vmem>>, %arg3: memref<1x384xf32, #tpu.memory_space<vmem>>, %arg4: memref<1x128xf32, #tpu.memory_space<vmem>>, %arg5: memref<128x2xf32, #tpu.memory_space<vmem>>, %arg6: memref<1x2xf32, #tpu.memory_space<vmem>>, %arg7: memref<8x2xf32, #tpu.memory_space<vmem>>) attributes {dimension_semantics = [], scalar_prefetch = 0 : i64, scratch_operands = 0 : i64, tpu.core_type = #tpu.core_type<tc>} {
    %c0 = arith.constant 0 : index
    %c0_0 = arith.constant 0 : index
    %0 = vector.load %arg0[%c0, %c0_0] : memref<64x16xf32, #tpu.memory_space<vmem>>, vector<64x16xf32>
    %c0_1 = arith.constant 0 : index
    %c0_2 = arith.constant 0 : index
    %1 = vector.load %arg1[%c0_1, %c0_2] : memref<16x384xf32, #tpu.memory_space<vmem>>, vector<16x384xf32>
    %cst = arith.constant dense<0.000000e+00> : vector<64x384xf32>
    %2 = tpu.matmul %0, %1, %cst {dimension_numbers = #tpu.dot_dimension_numbers<[1], [0], [0], [1], [0, 0, 1, 1], [], []>} : vector<64x16xf32>, vector<16x384xf32>, vector<64x384xf32> -> vector<64x384xf32>
    %c0_3 = arith.constant 0 : index
    %c0_4 = arith.constant 0 : index
    %3 = vector.load %arg3[%c0_3, %c0_4] : memref<1x384xf32, #tpu.memory_space<vmem>>, vector<1x384xf32>
    %4 = vector.broadcast %3 : vector<1x384xf32> to vector<64x384xf32>
    %5 = arith.addf %2, %4 : vector<64x384xf32>
    %c0_5 = arith.constant 0 : index
    %c0_6 = arith.constant 0 : index
    %6 = vector.load %arg2[%c0_5, %c0_6] : memref<128x384xf32, #tpu.memory_space<vmem>>, vector<128x384xf32>
    %c0_7 = arith.constant 0 : index
    %c0_8 = arith.constant 0 : index
    %7 = vector.load %arg4[%c0_7, %c0_8] : memref<1x128xf32, #tpu.memory_space<vmem>>, vector<1x128xf32>
    %8 = vector.shape_cast %7 : vector<1x128xf32> to vector<1x128xf32>
    %9 = vector.broadcast %8 : vector<1x128xf32> to vector<8x128xf32>
    %cst_9 = arith.constant 0.000000e+00 : f32
    %10 = vector.broadcast %cst_9 : f32 to vector<8x128xf32>
    %11 = vector.extract_strided_slice %5 {offsets = [0, 0], sizes = [8, 384], strides = [1, 1]} : vector<64x384xf32> to vector<8x384xf32>
    %cst_10 = arith.constant dense<0.000000e+00> : vector<8x384xf32>
    %12 = tpu.matmul %10, %6, %cst_10 {dimension_numbers = #tpu.dot_dimension_numbers<[1], [0], [0], [1], [0, 0, 1, 1], [], []>} : vector<8x128xf32>, vector<128x384xf32>, vector<8x384xf32> -> vector<8x384xf32>
    %13 = vector.extract_strided_slice %11 {offsets = [0, 0], sizes = [8, 128], strides = [1, 1]} : vector<8x384xf32> to vector<8x128xf32>
    %14 = vector.extract_strided_slice %12 {offsets = [0, 0], sizes = [8, 128], strides = [1, 1]} : vector<8x384xf32> to vector<8x128xf32>
    %15 = arith.addf %13, %14 : vector<8x128xf32>
    %16 = arith.negf %15 : vector<8x128xf32>
    %17 = math.exp %16 : vector<8x128xf32>
    %cst_11 = arith.constant 1.000000e+00 : f32
    %18 = vector.broadcast %cst_11 : f32 to vector<8x128xf32>
    %19 = arith.addf %18, %17 : vector<8x128xf32>
    %20 = arith.divf %18, %19 : vector<8x128xf32>
    %21 = vector.extract_strided_slice %11 {offsets = [0, 128], sizes = [8, 128], strides = [1, 1]} : vector<8x384xf32> to vector<8x128xf32>
    %22 = vector.extract_strided_slice %12 {offsets = [0, 128], sizes = [8, 128], strides = [1, 1]} : vector<8x384xf32> to vector<8x128xf32>
    %23 = arith.addf %21, %22 : vector<8x128xf32>
    %24 = arith.negf %23 : vector<8x128xf32>
    %25 = math.exp %24 : vector<8x128xf32>
    %cst_12 = arith.constant 1.000000e+00 : f32
    %26 = vector.broadcast %cst_12 : f32 to vector<8x128xf32>
    %27 = arith.addf %26, %25 : vector<8x128xf32>
    %28 = arith.divf %26, %27 : vector<8x128xf32>
    %29 = vector.extract_strided_slice %11 {offsets = [0, 256], sizes = [8, 128], strides = [1, 1]} : vector<8x384xf32> to vector<8x128xf32>
    %30 = vector.extract_strided_slice %12 {offsets = [0, 256], sizes = [8, 128], strides = [1, 1]} : vector<8x384xf32> to vector<8x128xf32>
    %31 = arith.addf %30, %9 : vector<8x128xf32>
    %32 = arith.mulf %20, %31 : vector<8x128xf32>
    %33 = arith.addf %29, %32 : vector<8x128xf32>
    %34 = math.tanh %33 : vector<8x128xf32>
    %cst_13 = arith.constant 1.000000e+00 : f32
    %35 = vector.broadcast %cst_13 : f32 to vector<8x128xf32>
    %36 = arith.subf %35, %28 : vector<8x128xf32>
    %37 = arith.mulf %36, %34 : vector<8x128xf32>
    %38 = arith.mulf %28, %10 : vector<8x128xf32>
    %39 = arith.addf %37, %38 : vector<8x128xf32>
    %40 = vector.extract_strided_slice %5 {offsets = [8, 0], sizes = [8, 384], strides = [1, 1]} : vector<64x384xf32> to vector<8x384xf32>
    %cst_14 = arith.constant dense<0.000000e+00> : vector<8x384xf32>
    %41 = tpu.matmul %39, %6, %cst_14 {dimension_numbers = #tpu.dot_dimension_numbers<[1], [0], [0], [1], [0, 0, 1, 1], [], []>} : vector<8x128xf32>, vector<128x384xf32>, vector<8x384xf32> -> vector<8x384xf32>
    %42 = vector.extract_strided_slice %40 {offsets = [0, 0], sizes = [8, 128], strides = [1, 1]} : vector<8x384xf32> to vector<8x128xf32>
    %43 = vector.extract_strided_slice %41 {offsets = [0, 0], sizes = [8, 128], strides = [1, 1]} : vector<8x384xf32> to vector<8x128xf32>
    %44 = arith.addf %42, %43 : vector<8x128xf32>
    %45 = arith.negf %44 : vector<8x128xf32>
    %46 = math.exp %45 : vector<8x128xf32>
    %cst_15 = arith.constant 1.000000e+00 : f32
    %47 = vector.broadcast %cst_15 : f32 to vector<8x128xf32>
    %48 = arith.addf %47, %46 : vector<8x128xf32>
    %49 = arith.divf %47, %48 : vector<8x128xf32>
    %50 = vector.extract_strided_slice %40 {offsets = [0, 128], sizes = [8, 128], strides = [1, 1]} : vector<8x384xf32> to vector<8x128xf32>
    %51 = vector.extract_strided_slice %41 {offsets = [0, 128], sizes = [8, 128], strides = [1, 1]} : vector<8x384xf32> to vector<8x128xf32>
    %52 = arith.addf %50, %51 : vector<8x128xf32>
    %53 = arith.negf %52 : vector<8x128xf32>
    %54 = math.exp %53 : vector<8x128xf32>
    %cst_16 = arith.constant 1.000000e+00 : f32
    %55 = vector.broadcast %cst_16 : f32 to vector<8x128xf32>
    %56 = arith.addf %55, %54 : vector<8x128xf32>
    %57 = arith.divf %55, %56 : vector<8x128xf32>
    %58 = vector.extract_strided_slice %40 {offsets = [0, 256], sizes = [8, 128], strides = [1, 1]} : vector<8x384xf32> to vector<8x128xf32>
    %59 = vector.extract_strided_slice %41 {offsets = [0, 256], sizes = [8, 128], strides = [1, 1]} : vector<8x384xf32> to vector<8x128xf32>
    %60 = arith.addf %59, %9 : vector<8x128xf32>
    %61 = arith.mulf %49, %60 : vector<8x128xf32>
    %62 = arith.addf %58, %61 : vector<8x128xf32>
    %63 = math.tanh %62 : vector<8x128xf32>
    %cst_17 = arith.constant 1.000000e+00 : f32
    %64 = vector.broadcast %cst_17 : f32 to vector<8x128xf32>
    %65 = arith.subf %64, %57 : vector<8x128xf32>
    %66 = arith.mulf %65, %63 : vector<8x128xf32>
    %67 = arith.mulf %57, %39 : vector<8x128xf32>
    %68 = arith.addf %66, %67 : vector<8x128xf32>
    %69 = vector.extract_strided_slice %5 {offsets = [16, 0], sizes = [8, 384], strides = [1, 1]} : vector<64x384xf32> to vector<8x384xf32>
    %cst_18 = arith.constant dense<0.000000e+00> : vector<8x384xf32>
    %70 = tpu.matmul %68, %6, %cst_18 {dimension_numbers = #tpu.dot_dimension_numbers<[1], [0], [0], [1], [0, 0, 1, 1], [], []>} : vector<8x128xf32>, vector<128x384xf32>, vector<8x384xf32> -> vector<8x384xf32>
    %71 = vector.extract_strided_slice %69 {offsets = [0, 0], sizes = [8, 128], strides = [1, 1]} : vector<8x384xf32> to vector<8x128xf32>
    %72 = vector.extract_strided_slice %70 {offsets = [0, 0], sizes = [8, 128], strides = [1, 1]} : vector<8x384xf32> to vector<8x128xf32>
    %73 = arith.addf %71, %72 : vector<8x128xf32>
    %74 = arith.negf %73 : vector<8x128xf32>
    %75 = math.exp %74 : vector<8x128xf32>
    %cst_19 = arith.constant 1.000000e+00 : f32
    %76 = vector.broadcast %cst_19 : f32 to vector<8x128xf32>
    %77 = arith.addf %76, %75 : vector<8x128xf32>
    %78 = arith.divf %76, %77 : vector<8x128xf32>
    %79 = vector.extract_strided_slice %69 {offsets = [0, 128], sizes = [8, 128], strides = [1, 1]} : vector<8x384xf32> to vector<8x128xf32>
    %80 = vector.extract_strided_slice %70 {offsets = [0, 128], sizes = [8, 128], strides = [1, 1]} : vector<8x384xf32> to vector<8x128xf32>
    %81 = arith.addf %79, %80 : vector<8x128xf32>
    %82 = arith.negf %81 : vector<8x128xf32>
    %83 = math.exp %82 : vector<8x128xf32>
    %cst_20 = arith.constant 1.000000e+00 : f32
    %84 = vector.broadcast %cst_20 : f32 to vector<8x128xf32>
    %85 = arith.addf %84, %83 : vector<8x128xf32>
    %86 = arith.divf %84, %85 : vector<8x128xf32>
    %87 = vector.extract_strided_slice %69 {offsets = [0, 256], sizes = [8, 128], strides = [1, 1]} : vector<8x384xf32> to vector<8x128xf32>
    %88 = vector.extract_strided_slice %70 {offsets = [0, 256], sizes = [8, 128], strides = [1, 1]} : vector<8x384xf32> to vector<8x128xf32>
    %89 = arith.addf %88, %9 : vector<8x128xf32>
    %90 = arith.mulf %78, %89 : vector<8x128xf32>
    %91 = arith.addf %87, %90 : vector<8x128xf32>
    %92 = math.tanh %91 : vector<8x128xf32>
    %cst_21 = arith.constant 1.000000e+00 : f32
    %93 = vector.broadcast %cst_21 : f32 to vector<8x128xf32>
    %94 = arith.subf %93, %86 : vector<8x128xf32>
    %95 = arith.mulf %94, %92 : vector<8x128xf32>
    %96 = arith.mulf %86, %68 : vector<8x128xf32>
    %97 = arith.addf %95, %96 : vector<8x128xf32>
    %98 = vector.extract_strided_slice %5 {offsets = [24, 0], sizes = [8, 384], strides = [1, 1]} : vector<64x384xf32> to vector<8x384xf32>
    %cst_22 = arith.constant dense<0.000000e+00> : vector<8x384xf32>
    %99 = tpu.matmul %97, %6, %cst_22 {dimension_numbers = #tpu.dot_dimension_numbers<[1], [0], [0], [1], [0, 0, 1, 1], [], []>} : vector<8x128xf32>, vector<128x384xf32>, vector<8x384xf32> -> vector<8x384xf32>
    %100 = vector.extract_strided_slice %98 {offsets = [0, 0], sizes = [8, 128], strides = [1, 1]} : vector<8x384xf32> to vector<8x128xf32>
    %101 = vector.extract_strided_slice %99 {offsets = [0, 0], sizes = [8, 128], strides = [1, 1]} : vector<8x384xf32> to vector<8x128xf32>
    %102 = arith.addf %100, %101 : vector<8x128xf32>
    %103 = arith.negf %102 : vector<8x128xf32>
    %104 = math.exp %103 : vector<8x128xf32>
    %cst_23 = arith.constant 1.000000e+00 : f32
    %105 = vector.broadcast %cst_23 : f32 to vector<8x128xf32>
    %106 = arith.addf %105, %104 : vector<8x128xf32>
    %107 = arith.divf %105, %106 : vector<8x128xf32>
    %108 = vector.extract_strided_slice %98 {offsets = [0, 128], sizes = [8, 128], strides = [1, 1]} : vector<8x384xf32> to vector<8x128xf32>
    %109 = vector.extract_strided_slice %99 {offsets = [0, 128], sizes = [8, 128], strides = [1, 1]} : vector<8x384xf32> to vector<8x128xf32>
    %110 = arith.addf %108, %109 : vector<8x128xf32>
    %111 = arith.negf %110 : vector<8x128xf32>
    %112 = math.exp %111 : vector<8x128xf32>
    %cst_24 = arith.constant 1.000000e+00 : f32
    %113 = vector.broadcast %cst_24 : f32 to vector<8x128xf32>
    %114 = arith.addf %113, %112 : vector<8x128xf32>
    %115 = arith.divf %113, %114 : vector<8x128xf32>
    %116 = vector.extract_strided_slice %98 {offsets = [0, 256], sizes = [8, 128], strides = [1, 1]} : vector<8x384xf32> to vector<8x128xf32>
    %117 = vector.extract_strided_slice %99 {offsets = [0, 256], sizes = [8, 128], strides = [1, 1]} : vector<8x384xf32> to vector<8x128xf32>
    %118 = arith.addf %117, %9 : vector<8x128xf32>
    %119 = arith.mulf %107, %118 : vector<8x128xf32>
    %120 = arith.addf %116, %119 : vector<8x128xf32>
    %121 = math.tanh %120 : vector<8x128xf32>
    %cst_25 = arith.constant 1.000000e+00 : f32
    %122 = vector.broadcast %cst_25 : f32 to vector<8x128xf32>
    %123 = arith.subf %122, %115 : vector<8x128xf32>
    %124 = arith.mulf %123, %121 : vector<8x128xf32>
    %125 = arith.mulf %115, %97 : vector<8x128xf32>
    %126 = arith.addf %124, %125 : vector<8x128xf32>
    %127 = vector.extract_strided_slice %5 {offsets = [32, 0], sizes = [8, 384], strides = [1, 1]} : vector<64x384xf32> to vector<8x384xf32>
    %cst_26 = arith.constant dense<0.000000e+00> : vector<8x384xf32>
    %128 = tpu.matmul %126, %6, %cst_26 {dimension_numbers = #tpu.dot_dimension_numbers<[1], [0], [0], [1], [0, 0, 1, 1], [], []>} : vector<8x128xf32>, vector<128x384xf32>, vector<8x384xf32> -> vector<8x384xf32>
    %129 = vector.extract_strided_slice %127 {offsets = [0, 0], sizes = [8, 128], strides = [1, 1]} : vector<8x384xf32> to vector<8x128xf32>
    %130 = vector.extract_strided_slice %128 {offsets = [0, 0], sizes = [8, 128], strides = [1, 1]} : vector<8x384xf32> to vector<8x128xf32>
    %131 = arith.addf %129, %130 : vector<8x128xf32>
    %132 = arith.negf %131 : vector<8x128xf32>
    %133 = math.exp %132 : vector<8x128xf32>
    %cst_27 = arith.constant 1.000000e+00 : f32
    %134 = vector.broadcast %cst_27 : f32 to vector<8x128xf32>
    %135 = arith.addf %134, %133 : vector<8x128xf32>
    %136 = arith.divf %134, %135 : vector<8x128xf32>
    %137 = vector.extract_strided_slice %127 {offsets = [0, 128], sizes = [8, 128], strides = [1, 1]} : vector<8x384xf32> to vector<8x128xf32>
    %138 = vector.extract_strided_slice %128 {offsets = [0, 128], sizes = [8, 128], strides = [1, 1]} : vector<8x384xf32> to vector<8x128xf32>
    %139 = arith.addf %137, %138 : vector<8x128xf32>
    %140 = arith.negf %139 : vector<8x128xf32>
    %141 = math.exp %140 : vector<8x128xf32>
    %cst_28 = arith.constant 1.000000e+00 : f32
    %142 = vector.broadcast %cst_28 : f32 to vector<8x128xf32>
    %143 = arith.addf %142, %141 : vector<8x128xf32>
    %144 = arith.divf %142, %143 : vector<8x128xf32>
    %145 = vector.extract_strided_slice %127 {offsets = [0, 256], sizes = [8, 128], strides = [1, 1]} : vector<8x384xf32> to vector<8x128xf32>
    %146 = vector.extract_strided_slice %128 {offsets = [0, 256], sizes = [8, 128], strides = [1, 1]} : vector<8x384xf32> to vector<8x128xf32>
    %147 = arith.addf %146, %9 : vector<8x128xf32>
    %148 = arith.mulf %136, %147 : vector<8x128xf32>
    %149 = arith.addf %145, %148 : vector<8x128xf32>
    %150 = math.tanh %149 : vector<8x128xf32>
    %cst_29 = arith.constant 1.000000e+00 : f32
    %151 = vector.broadcast %cst_29 : f32 to vector<8x128xf32>
    %152 = arith.subf %151, %144 : vector<8x128xf32>
    %153 = arith.mulf %152, %150 : vector<8x128xf32>
    %154 = arith.mulf %144, %126 : vector<8x128xf32>
    %155 = arith.addf %153, %154 : vector<8x128xf32>
    %156 = vector.extract_strided_slice %5 {offsets = [40, 0], sizes = [8, 384], strides = [1, 1]} : vector<64x384xf32> to vector<8x384xf32>
    %cst_30 = arith.constant dense<0.000000e+00> : vector<8x384xf32>
    %157 = tpu.matmul %155, %6, %cst_30 {dimension_numbers = #tpu.dot_dimension_numbers<[1], [0], [0], [1], [0, 0, 1, 1], [], []>} : vector<8x128xf32>, vector<128x384xf32>, vector<8x384xf32> -> vector<8x384xf32>
    %158 = vector.extract_strided_slice %156 {offsets = [0, 0], sizes = [8, 128], strides = [1, 1]} : vector<8x384xf32> to vector<8x128xf32>
    %159 = vector.extract_strided_slice %157 {offsets = [0, 0], sizes = [8, 128], strides = [1, 1]} : vector<8x384xf32> to vector<8x128xf32>
    %160 = arith.addf %158, %159 : vector<8x128xf32>
    %161 = arith.negf %160 : vector<8x128xf32>
    %162 = math.exp %161 : vector<8x128xf32>
    %cst_31 = arith.constant 1.000000e+00 : f32
    %163 = vector.broadcast %cst_31 : f32 to vector<8x128xf32>
    %164 = arith.addf %163, %162 : vector<8x128xf32>
    %165 = arith.divf %163, %164 : vector<8x128xf32>
    %166 = vector.extract_strided_slice %156 {offsets = [0, 128], sizes = [8, 128], strides = [1, 1]} : vector<8x384xf32> to vector<8x128xf32>
    %167 = vector.extract_strided_slice %157 {offsets = [0, 128], sizes = [8, 128], strides = [1, 1]} : vector<8x384xf32> to vector<8x128xf32>
    %168 = arith.addf %166, %167 : vector<8x128xf32>
    %169 = arith.negf %168 : vector<8x128xf32>
    %170 = math.exp %169 : vector<8x128xf32>
    %cst_32 = arith.constant 1.000000e+00 : f32
    %171 = vector.broadcast %cst_32 : f32 to vector<8x128xf32>
    %172 = arith.addf %171, %170 : vector<8x128xf32>
    %173 = arith.divf %171, %172 : vector<8x128xf32>
    %174 = vector.extract_strided_slice %156 {offsets = [0, 256], sizes = [8, 128], strides = [1, 1]} : vector<8x384xf32> to vector<8x128xf32>
    %175 = vector.extract_strided_slice %157 {offsets = [0, 256], sizes = [8, 128], strides = [1, 1]} : vector<8x384xf32> to vector<8x128xf32>
    %176 = arith.addf %175, %9 : vector<8x128xf32>
    %177 = arith.mulf %165, %176 : vector<8x128xf32>
    %178 = arith.addf %174, %177 : vector<8x128xf32>
    %179 = math.tanh %178 : vector<8x128xf32>
    %cst_33 = arith.constant 1.000000e+00 : f32
    %180 = vector.broadcast %cst_33 : f32 to vector<8x128xf32>
    %181 = arith.subf %180, %173 : vector<8x128xf32>
    %182 = arith.mulf %181, %179 : vector<8x128xf32>
    %183 = arith.mulf %173, %155 : vector<8x128xf32>
    %184 = arith.addf %182, %183 : vector<8x128xf32>
    %185 = vector.extract_strided_slice %5 {offsets = [48, 0], sizes = [8, 384], strides = [1, 1]} : vector<64x384xf32> to vector<8x384xf32>
    %cst_34 = arith.constant dense<0.000000e+00> : vector<8x384xf32>
    %186 = tpu.matmul %184, %6, %cst_34 {dimension_numbers = #tpu.dot_dimension_numbers<[1], [0], [0], [1], [0, 0, 1, 1], [], []>} : vector<8x128xf32>, vector<128x384xf32>, vector<8x384xf32> -> vector<8x384xf32>
    %187 = vector.extract_strided_slice %185 {offsets = [0, 0], sizes = [8, 128], strides = [1, 1]} : vector<8x384xf32> to vector<8x128xf32>
    %188 = vector.extract_strided_slice %186 {offsets = [0, 0], sizes = [8, 128], strides = [1, 1]} : vector<8x384xf32> to vector<8x128xf32>
    %189 = arith.addf %187, %188 : vector<8x128xf32>
    %190 = arith.negf %189 : vector<8x128xf32>
    %191 = math.exp %190 : vector<8x128xf32>
    %cst_35 = arith.constant 1.000000e+00 : f32
    %192 = vector.broadcast %cst_35 : f32 to vector<8x128xf32>
    %193 = arith.addf %192, %191 : vector<8x128xf32>
    %194 = arith.divf %192, %193 : vector<8x128xf32>
    %195 = vector.extract_strided_slice %185 {offsets = [0, 128], sizes = [8, 128], strides = [1, 1]} : vector<8x384xf32> to vector<8x128xf32>
    %196 = vector.extract_strided_slice %186 {offsets = [0, 128], sizes = [8, 128], strides = [1, 1]} : vector<8x384xf32> to vector<8x128xf32>
    %197 = arith.addf %195, %196 : vector<8x128xf32>
    %198 = arith.negf %197 : vector<8x128xf32>
    %199 = math.exp %198 : vector<8x128xf32>
    %cst_36 = arith.constant 1.000000e+00 : f32
    %200 = vector.broadcast %cst_36 : f32 to vector<8x128xf32>
    %201 = arith.addf %200, %199 : vector<8x128xf32>
    %202 = arith.divf %200, %201 : vector<8x128xf32>
    %203 = vector.extract_strided_slice %185 {offsets = [0, 256], sizes = [8, 128], strides = [1, 1]} : vector<8x384xf32> to vector<8x128xf32>
    %204 = vector.extract_strided_slice %186 {offsets = [0, 256], sizes = [8, 128], strides = [1, 1]} : vector<8x384xf32> to vector<8x128xf32>
    %205 = arith.addf %204, %9 : vector<8x128xf32>
    %206 = arith.mulf %194, %205 : vector<8x128xf32>
    %207 = arith.addf %203, %206 : vector<8x128xf32>
    %208 = math.tanh %207 : vector<8x128xf32>
    %cst_37 = arith.constant 1.000000e+00 : f32
    %209 = vector.broadcast %cst_37 : f32 to vector<8x128xf32>
    %210 = arith.subf %209, %202 : vector<8x128xf32>
    %211 = arith.mulf %210, %208 : vector<8x128xf32>
    %212 = arith.mulf %202, %184 : vector<8x128xf32>
    %213 = arith.addf %211, %212 : vector<8x128xf32>
    %214 = vector.extract_strided_slice %5 {offsets = [56, 0], sizes = [8, 384], strides = [1, 1]} : vector<64x384xf32> to vector<8x384xf32>
    %cst_38 = arith.constant dense<0.000000e+00> : vector<8x384xf32>
    %215 = tpu.matmul %213, %6, %cst_38 {dimension_numbers = #tpu.dot_dimension_numbers<[1], [0], [0], [1], [0, 0, 1, 1], [], []>} : vector<8x128xf32>, vector<128x384xf32>, vector<8x384xf32> -> vector<8x384xf32>
    %216 = vector.extract_strided_slice %214 {offsets = [0, 0], sizes = [8, 128], strides = [1, 1]} : vector<8x384xf32> to vector<8x128xf32>
    %217 = vector.extract_strided_slice %215 {offsets = [0, 0], sizes = [8, 128], strides = [1, 1]} : vector<8x384xf32> to vector<8x128xf32>
    %218 = arith.addf %216, %217 : vector<8x128xf32>
    %219 = arith.negf %218 : vector<8x128xf32>
    %220 = math.exp %219 : vector<8x128xf32>
    %cst_39 = arith.constant 1.000000e+00 : f32
    %221 = vector.broadcast %cst_39 : f32 to vector<8x128xf32>
    %222 = arith.addf %221, %220 : vector<8x128xf32>
    %223 = arith.divf %221, %222 : vector<8x128xf32>
    %224 = vector.extract_strided_slice %214 {offsets = [0, 128], sizes = [8, 128], strides = [1, 1]} : vector<8x384xf32> to vector<8x128xf32>
    %225 = vector.extract_strided_slice %215 {offsets = [0, 128], sizes = [8, 128], strides = [1, 1]} : vector<8x384xf32> to vector<8x128xf32>
    %226 = arith.addf %224, %225 : vector<8x128xf32>
    %227 = arith.negf %226 : vector<8x128xf32>
    %228 = math.exp %227 : vector<8x128xf32>
    %cst_40 = arith.constant 1.000000e+00 : f32
    %229 = vector.broadcast %cst_40 : f32 to vector<8x128xf32>
    %230 = arith.addf %229, %228 : vector<8x128xf32>
    %231 = arith.divf %229, %230 : vector<8x128xf32>
    %232 = vector.extract_strided_slice %214 {offsets = [0, 256], sizes = [8, 128], strides = [1, 1]} : vector<8x384xf32> to vector<8x128xf32>
    %233 = vector.extract_strided_slice %215 {offsets = [0, 256], sizes = [8, 128], strides = [1, 1]} : vector<8x384xf32> to vector<8x128xf32>
    %234 = arith.addf %233, %9 : vector<8x128xf32>
    %235 = arith.mulf %223, %234 : vector<8x128xf32>
    %236 = arith.addf %232, %235 : vector<8x128xf32>
    %237 = math.tanh %236 : vector<8x128xf32>
    %cst_41 = arith.constant 1.000000e+00 : f32
    %238 = vector.broadcast %cst_41 : f32 to vector<8x128xf32>
    %239 = arith.subf %238, %231 : vector<8x128xf32>
    %240 = arith.mulf %239, %237 : vector<8x128xf32>
    %241 = arith.mulf %231, %213 : vector<8x128xf32>
    %242 = arith.addf %240, %241 : vector<8x128xf32>
    %c0_42 = arith.constant 0 : index
    %c0_43 = arith.constant 0 : index
    %243 = vector.load %arg5[%c0_42, %c0_43] : memref<128x2xf32, #tpu.memory_space<vmem>>, vector<128x2xf32>
    %cst_44 = arith.constant dense<0.000000e+00> : vector<8x2xf32>
    %244 = tpu.matmul %242, %243, %cst_44 {dimension_numbers = #tpu.dot_dimension_numbers<[1], [0], [0], [1], [0, 0, 1, 1], [], []>} : vector<8x128xf32>, vector<128x2xf32>, vector<8x2xf32> -> vector<8x2xf32>
    %c0_45 = arith.constant 0 : index
    %c0_46 = arith.constant 0 : index
    %245 = vector.load %arg6[%c0_45, %c0_46] : memref<1x2xf32, #tpu.memory_space<vmem>>, vector<1x2xf32>
    %246 = vector.broadcast %245 : vector<1x2xf32> to vector<8x2xf32>
    %247 = arith.addf %244, %246 : vector<8x2xf32>
    %248 = arith.negf %247 : vector<8x2xf32>
    %249 = math.exp %248 : vector<8x2xf32>
    %cst_47 = arith.constant 1.000000e+00 : f32
    %250 = vector.broadcast %cst_47 : f32 to vector<8x2xf32>
    %251 = arith.addf %250, %249 : vector<8x2xf32>
    %252 = arith.divf %250, %251 : vector<8x2xf32>
    %c0_48 = arith.constant 0 : index
    %c0_49 = arith.constant 0 : index
    %253 = vector.load %arg7[%c0_48, %c0_49] : memref<8x2xf32, #tpu.memory_space<vmem>>, vector<8x2xf32>
    tpu.vector_store %arg7[%c0_48, %c0_49], %252 {strides = array<i32>} : memref<8x2xf32, #tpu.memory_space<vmem>>, vector<8x2xf32>,
    return
  }
}

</mosaic_0001>

<bundles_post_ra>
// kernel: tpu_custom_call.1
= control target key start
LH: loop header
LB: loop body
LE: loop exit
PB: predicated region body
PF: predicated region fallthrough
CT: control target
= control target key end

     0   :  { %12 = vsyncpa [#allocation3], 0  ;;  %s2934_s24 = smov [#allocation2]   ;;  %s3514_s0 = inlined_call_operand.vmem [shape: f32[64,16], index: 0, kind: input, shape index: {}]   ;;  %s3515_s1 = inlined_call_operand.vmem [shape: f32[16,384], index: 1, kind: input, shape index: {}]   ;;  %s3516_s2 = inlined_call_operand.hbm [shape: f32[128,384], index: 2, kind: input, shape index: {}]   ;;  %s3517_s3 = inlined_call_operand.vmem [shape: f32[1,384], index: 3, kind: input, shape index: {}]   ;;  %s3518_s4 = inlined_call_operand.vmem [shape: f32[1,128], index: 4, kind: input, shape index: {}]   ;;  %s3519_s5 = inlined_call_operand.vmem [shape: f32[128,2], index: 5, kind: input, shape index: {}]   ;;  %s3520_s6 = inlined_call_operand.vmem [shape: f32[1,2], index: 6, kind: input, shape index: {}]   ;;  %s3521_s7 = inlined_call_operand.vmem [shape: f32[8,2], index: 7, kind: output, shape index: {}]  }
   0x1   :  { %s22_s25 = sshll.u32 %s2934_s24, 4  ;;  %s2910_s28 = scalar_lea.hbm %s3516_s2, 6144  ;;  %s23_s25 = int_to_ptr.vmem [resolvable:$true] %s22_s25 }
   0x2   :  { %p2911_p0 = scmp.ne.s32.totalorder %s3516_s2, %s2910_s28  ;;  %p2914_p1 = scmp.lt.u32.totalorder %s2910_s28, %s3516_s2 }
   0x4   :  { %p2916_p2 = pnand %p2914_p1, %p2911_p0 }
   0x6   :  { %2919 = shalt.err (!%p2916_p2)
}
   0x7   :  { %s2920_s10 = scalar_lea.vmem %s23_s25, 6144  ;;  %p2925_p4 = scmp.lt.s32.totalorder %s23_s25, %s23_s25 }
   0x8   :  { %p2921_p3 = scmp.ne.s32.totalorder %s23_s25, %s2920_s10  ;;  %p2926_p5 = scmp.lt.s32.totalorder %s2920_s10, %s2920_s10 }
   0xa   :  { %p2927_p6 = por %p2926_p5, %p2925_p4 }
   0xc   :  { %p2928_p7 = pnand %p2927_p6, %p2921_p3 }
   0xe   :  { %2931 = shalt.err (!%p2928_p7)
}
   0xf   :  { %s2935_s11 = smov 384   ;;  %s2936_s12 = smov 24  }
  0x10   :  { %28 = dma.hbm_to_vmem [thread:$0]  %s3516_s2, 6144, %s23_s25, [#allocation3], %s2935_s11, %s2935_s11, %s2936_s12  }
  0x11   :  { %2932 = dma.done.wait [#allocation3], 6144  }
  0x12   :  { %2933 = vsyncadd [#allocation3], 4294961152  ;;  %v2937_v0 = vmov 0.0   ;;  %v49_v1 = vld [vmem:[%s3515_s1 + $0x8] sm:$0xff]  ;;  %v52_v2 = vld [vmem:[%s3515_s1 + $0x20] sm:$0xff]  ;;  %vm71_vm0 = vcmask 130048  }
  0x13   :  { %160 = vmatprep.mubr.f32.mxu0 %v2937_v0  ;;  %v48_v3 = vld [vmem:[%s3515_s1] sm:$0xff]  ;;  %v2308_v4 = vpack.c.bf16 %v52_v2, %v49_v1  ;;  %v51_v5 = vld [vmem:[%s3515_s1 + $0x18] sm:$0xff]  ;;  %v315_v7 = vld [vmem:[#allocation2 + $0x8] sm:$0xff]  ;;  %v2938_v48 = vmov 0.0|0.0   ;;  %vm2939_vm1 = vmmov 0   ;;  %vm1772_vm2 = vcmask 15360  }
  0x14   :  { %v40_v6 = vld [vmem:[%s3514_s0] sm:$0xff]  ;;  %v2310_v8 = vpack.c.bf16 %v51_v5, %v48_v3  ;;  %v317_v11 = vld [vmem:[#allocation2 + $0x18] sm:$0xff]  ;;  %v324_v14 = vld [vmem:[#allocation2 + $0x50] sm:$0xff] }
  0x15   :  { %v318_v9 = vld [vmem:[#allocation2 + $0x20] sm:$0xff]  ;;  %1981 = vmatprep.mubr.msk.f32.mxu1 %vm71_vm0, %v40_v6  ;;  %2309 = vmatprep.subr.bf16.mxu0 %v2308_v4  ;;  %v321_v13 = vld [vmem:[#allocation2 + $0x38] sm:$0xff]  ;;  %v320_v17 = vld [vmem:[#allocation2 + $0x30] sm:$0xff] }
  0x16   :  { %v314_v10 = vld [vmem:[#allocation2] sm:$0xff]  ;;  %v3009_v12 = vpack.c.bf16 %v318_v9, %v315_v7  ;;  %2311 = vmatpush1.bf16.msra.mxu0 %v2310_v8  ;;  %v3014_v16 = vpack.c.bf16 %v324_v14, %v321_v13  ;;  %v323_v18 = vld [vmem:[#allocation2 + $0x48] sm:$0xff]  ;;  %v329_v25 = vld [vmem:[#allocation2 + $0x78] sm:$0xff] }
  0x17   :  { %v3011_v15 = vpack.c.bf16 %v317_v11, %v314_v10  ;;  %v327_v19 = vld [vmem:[#allocation2 + $0x68] sm:$0xff]  ;;  %v330_v20 = vld [vmem:[#allocation2 + $0x80] sm:$0xff]  ;;  %v3022_v22 = vpack.c.bf16 %v323_v18, %v320_v17  ;;  %v333_v26 = vld [vmem:[#allocation2 + $0x98] sm:$0xff] }
  0x18   :  { %2317 = vmatprep.subr.bf16.mxu0 %v3009_v12  ;;  %v41_v21 = vld [vmem:[%s3514_s0 + $0x8] sm:$0xff]  ;;  %v3025_v23 = vpack.c.bf16 %v330_v20, %v327_v19  ;;  %v326_v24 = vld [vmem:[#allocation2 + $0x60] sm:$0xff]  ;;  %v336_v27 = vld [vmem:[#allocation2 + $0xb0] sm:$0xff] }
  0x19   :  { %1779 = vmatmul.mubr.msk.f32.vlgmr.msra.gmra.mrb[0].mxu0 %vm71_vm0, %v40_v6  ;;  %v50_v28 = vld [vmem:[%s3515_s1 + $0x10] sm:$0xff]  ;;  %v53_v29 = vld [vmem:[%s3515_s1 + $0x28] sm:$0xff]  ;;  %v3039_v31 = vpack.c.bf16 %v329_v25, %v326_v24  ;;  %v3042_v33 = vpack.c.bf16 %v336_v27, %v333_v26  ;;  %v342_v38 = vld [vmem:[#allocation2 + $0xe0] sm:$0xff] }
  0x1a   :  { %2319 = vmatpush1.bf16.msra.mxu0 %v3011_v15  ;;  %166 = vmatprep.mubr.f32.mxu0 %v2937_v0  ;;  %v42_v30 = vld [vmem:[%s3514_s0 + $0x10] sm:$0xff]  ;;  %v2312_v32 = vpack.c.bf16 %v53_v29, %v50_v28  ;;  %v335_v35 = vld [vmem:[#allocation2 + $0xa8] sm:$0xff]  ;;  %v43_v41 = vld [vmem:[%s3514_s0 + $0x18] sm:$0xff] }
  0x1b   :  { %2321 = vmatprep.subr.bf16.mxu0 %v3014_v16  ;;  %v332_v34 = vld [vmem:[#allocation2 + $0x90] sm:$0xff]  ;;  %v339_v37 = vld [vmem:[#allocation2 + $0xc8] sm:$0xff]  ;;  %v322_v43 = vld [vmem:[#allocation2 + $0x40] sm:$0xff] }
  0x1c   :  { %v316_v36 = vld [vmem:[#allocation2 + $0x10] sm:$0xff]  ;;  %2313 = vmatprep.subr.bf16.mxu1 %v2312_v32  ;;  %v319_v39 = vld [vmem:[#allocation2 + $0x28] sm:$0xff]  ;;  %v3052_v42 = vpack.c.bf16 %v335_v35, %v332_v34  ;;  %v325_v44 = vld [vmem:[#allocation2 + $0x58] sm:$0xff]  ;;  %v3055_v45 = vpack.c.bf16 %v342_v38, %v339_v37  ;;  %v56_v35 = vlaneseq }
  0x1d   :  { %1780 = vmatmul.mubr.msk.f32.gmra.mrb[2].mxu0 %vm71_vm0, %v41_v21  ;;  %2315 = vmatpush3.bf16.msra.mxu1 %v2312_v32  ;;  %v3045_v40 = vpack.c.bf16 %v319_v39, %v316_v36  ;;  %v338_v46 = vld [vmem:[#allocation2 + $0xc0] sm:$0xff]  ;;  %v341_v47 = vld [vmem:[#allocation2 + $0xd8] sm:$0xff]  ;;  %v348_v50 = vld [vmem:[#allocation2 + $0x110] sm:$0xff]  ;;  %v3061_v51 = vpack.c.bf16 %v325_v44, %v322_v43 }
  0x1e   :  { %2323 = vmatpush1.bf16.msra.mxu0 %v3022_v22  ;;  %172 = vmatprep.mubr.f32.mxu0 %v2937_v0  ;;  %v345_v49 = vld [vmem:[#allocation2 + $0xf8] sm:$0xff]  ;;  %v44_v52 = vld [vmem:[%s3514_s0 + $0x20] sm:$0xff]  ;;  %v3068_v53 = vpack.c.bf16 %v341_v47, %v338_v46  ;;  %v328_v54 = vld [vmem:[#allocation2 + $0x70] sm:$0xff]  ;;  %v57_v36 = vshrl.u32 %v56_v35, 7 }
  0x1f   :  { %2325 = vmatprep.subr.bf16.mxu0 %v3025_v23  ;;  %2348 = vmatprep.subr.bf16.mxu1 %v2938_v48  ;;  %v331_v55 = vld [vmem:[#allocation2 + $0x88] sm:$0xff]  ;;  %v3071_v56 = vpack.c.bf16 %v348_v50, %v345_v49  ;;  %v344_v57 = vld [vmem:[#allocation2 + $0xf0] sm:$0xff]  ;;  %v354_v60 = vld [vmem:[#allocation2 + $0x140] sm:$0xff] }
  0x20   :  { %1982 = vmatmul.mubr.msk.f32.vlgmr.msra.gmra.mrb[0].mxu1 %vm71_vm0, %v41_v21  ;;  %v347_v58 = vld [vmem:[#allocation2 + $0x108] sm:$0xff]  ;;  %v3077_v61 = vpack.c.bf16 %v331_v55, %v328_v54  ;;  %v334_v1 = vld [vmem:[#allocation2 + $0xa0] sm:$0xff]  ;;  %v337_v2 = vld [vmem:[#allocation2 + $0xb8] sm:$0xff]  ;;  %v66_v37 = vsub.s32 2, %v57_v36  ;;  %v62_v55 = vsub.s32 1, %v57_v36 }
  0x21   :  { %1781 = vmatmul.mubr.msk.f32.gmra.mrb[4].mxu0 %vm71_vm0, %v42_v30  ;;  %2350 = vmatpush3.bf16.msra.mxu1 %v3045_v40  ;;  %v351_v59 = vld [vmem:[#allocation2 + $0x128] sm:$0xff]  ;;  %v3084_v63 = vpack.c.bf16 %v347_v58, %v344_v57  ;;  %v350_v4 = vld [vmem:[#allocation2 + $0x120] sm:$0xff]  ;;  %v353_v5 = vld [vmem:[#allocation2 + $0x138] sm:$0xff]  ;;  %v3093_v8 = vpack.c.bf16 %v337_v2, %v334_v1 }
  0x22   :  { %2327 = vmatpush1.bf16.msra.mxu0 %v3039_v31  ;;  %178 = vmatprep.mubr.f32.mxu0 %v2937_v0  ;;  %v45_v62 = vld [vmem:[%s3514_s0 + $0x28] sm:$0xff]  ;;  %v3087_v3 = vpack.c.bf16 %v354_v60, %v351_v59  ;;  %v357_v6 = vld [vmem:[#allocation2 + $0x158] sm:$0xff]  ;;  %v360_v7 = vld [vmem:[#allocation2 + $0x170] sm:$0xff]  ;;  %v3100_v10 = vpack.c.bf16 %v353_v5, %v350_v4 }
  0x23   :  { %2329 = vmatprep.subr.bf16.mxu0 %v3042_v33  ;;  %2351 = vmatprep.subr.bf16.mxu1 %v2938_v48  ;;  %v46_v9 = vld [vmem:[%s3514_s0 + $0x30] sm:$0xff]  ;;  %v343_v13 = vld [vmem:[#allocation2 + $0xe8] sm:$0xff]  ;;  %v3103_v14 = vpack.c.bf16 %v360_v7, %v357_v6  ;;  %v47_v20 = vld [vmem:[%s3514_s0 + $0x38] sm:$0xff] }
  0x24   :  { %1984 = vmatprep.mubr.msk.f32.mxu1 %vm71_vm0, %v42_v30  ;;  %v340_v11 = vld [vmem:[#allocation2 + $0xd0] sm:$0xff]  ;;  %v359_v18 = vld [vmem:[#allocation2 + $0x168] sm:$0xff]  ;;  %v346_v24 = vld [vmem:[#allocation2 + $0x100] sm:$0xff] }
  0x25   :  { %1782 = vmatmul.mubr.msk.f32.gmra.mrb[6].mxu0 %vm71_vm0, %v43_v41  ;;  %2353 = vmatpush3.bf16.msra.mxu1 %v3061_v51  ;;  %v356_v17 = vld [vmem:[#allocation2 + $0x150] sm:$0xff]  ;;  %v3109_v19 = vpack.c.bf16 %v343_v13, %v340_v11  ;;  %v349_v25 = vld [vmem:[#allocation2 + $0x118] sm:$0xff]  ;;  %v355_v28 = vld [vmem:[#allocation2 + $0x148] sm:$0xff] }
  0x26   :  { %2331 = vmatpush1.bf16.msra.mxu0 %v3052_v42  ;;  %184 = vmatprep.mubr.f32.mxu0 %v2937_v0  ;;  %v3116_v21 = vpack.c.bf16 %v359_v18, %v356_v17  ;;  %v3123_v26 = vpack.c.bf16 %v349_v25, %v346_v24  ;;  %v352_v27 = vld [vmem:[#allocation2 + $0x130] sm:$0xff]  ;;  %v358_v30 = vld [vmem:[#allocation2 + $0x160] sm:$0xff]  ;;  %v361_v32 = vld [vmem:[#allocation2 + $0x178] sm:$0xff] }
  0x27   :  { %2333 = vmatprep.subr.bf16.mxu0 %v3055_v45  ;;  %2354 = vmatprep.subr.bf16.mxu1 %v2938_v48  ;;  %v3133_v29 = vpack.c.bf16 %v355_v28, %v352_v27  ;;  %v3142_v34 = vpack.c.bf16 %v361_v32, %v358_v30  ;;  %v54_v38 = vld [vmem:[%s3517_s3] sm:$0x7] }
  0x28   :  { %1985 = vmatmul.mubr.msk.f32.gmra.mrb[2].mxu1 %vm71_vm0, %v43_v41  ;;  %v67_v39 = vrot.slane %v54_v38, %v66_v37  ;;  %v3195_v2 = vrot.slane %v54_v38, %v62_v55  ;;  %v3206_v28 = vld [vmem:[%s3518_s4] ss:$0 sm:$0xff] }
  0x29   :  { %1783 = vmatmul.mubr.msk.f32.gmra.mrb[8].mxu0 %vm71_vm0, %v44_v52  ;;  %2356 = vmatpush3.bf16.msra.mxu1 %v3077_v61 }
  0x2a   :  { %2335 = vmatpush1.bf16.msra.mxu0 %v3068_v53  ;;  %190 = vmatprep.mubr.f32.mxu0 %v2937_v0 }
  0x2b   :  { %2337 = vmatprep.subr.bf16.mxu0 %v3071_v56  ;;  %2357 = vmatprep.subr.bf16.mxu1 %v2938_v48 }
  0x2c   :  { %1987 = vmatprep.mubr.msk.f32.mxu1 %vm71_vm0, %v44_v52  ;;  %v58_v52 = vsub.s32 0, %v57_v36 }
  0x2d   :  { %1784 = vmatmul.mubr.msk.f32.gmra.mrb[10].mxu0 %vm71_vm0, %v45_v62  ;;  %2359 = vmatpush3.bf16.msra.mxu1 %v3093_v8 }
  0x2e   :  { %2339 = vmatpush1.bf16.msra.mxu0 %v3084_v63  ;;  %196 = vmatprep.mubr.f32.mxu0 %v2937_v0  ;;  %v3191_v59 = vrot.slane %v54_v38, %v58_v52 }
  0x2f   :  { %2341 = vmatprep.subr.bf16.mxu0 %v3087_v3  ;;  %2360 = vmatprep.subr.bf16.mxu1 %v2938_v48 }
  0x30   :  { %1988 = vmatmul.mubr.msk.f32.gmra.mrb[4].mxu1 %vm71_vm0, %v45_v62 }
  0x31   :  { %1785 = vmatmul.mubr.msk.f32.gmra.mrb[12].mxu0 %vm71_vm0, %v46_v9  ;;  %2362 = vmatpush3.bf16.msra.mxu1 %v3109_v19 }
  0x32   :  { %2343 = vmatpush1.bf16.msra.mxu0 %v3100_v10  ;;  %202 = vmatprep.mubr.f32.mxu0 %v2937_v0 }
  0x33   :  { %2345 = vmatprep.subr.bf16.mxu0 %v3103_v14  ;;  %2363 = vmatprep.subr.bf16.mxu1 %v2938_v48 }
  0x34   :  { %1990 = vmatprep.mubr.msk.f32.mxu1 %vm71_vm0, %v46_v9 }
  0x35   :  { %1786 = vmatmul.mubr.msk.f32.gmra.mrb[14].mxu0 %vm71_vm0, %v47_v20  ;;  %1991 = vmatmul.mubr.msk.f32.gmra.mrb[6].mxu1 %vm71_vm0, %v47_v20 }
  0x36   :  { %2347 = vmatpush1.bf16.msra.mxu0 %v3116_v21  ;;  %433 = vmatprep.mubr.f32.mxu0 %v2937_v0 }
  0x37   :  { %2373 = vmatprep.subr.bf16.mxu0 %v3009_v12  ;;  %2365 = vmatpush3.bf16.msra.mxu1 %v3123_v26 }
  0x38   :  { %2366 = vmatprep.subr.bf16.mxu1 %v2938_v48  ;;  %2025 = vmatprep.mubr.msk.f32.mxu1 %vm2939_vm1, %v2937_v0 }
  0x39   :  { %434 = vmatmul.mubr.f32.vlgmr.msra.gmra.mrb[0].mxu0 %v2937_v0 }
  0x3a   :  { %2375 = vmatpush1.bf16.msra.mxu0 %v3011_v15  ;;  %596 = vmatprep.mubr.f32.mxu0 %v2937_v0 }
  0x3b   :  { %2377 = vmatprep.subr.bf16.mxu0 %v3014_v16  ;;  %2368 = vmatpush3.bf16.msra.mxu1 %v3133_v29 }
  0x3c   :  { %2369 = vmatprep.subr.bf16.mxu1 %v2938_v48 }
  0x3e   :  { %2379 = vmatpush1.bf16.msra.mxu0 %v3022_v22 }
  0x3f   :  { %2381 = vmatprep.subr.bf16.mxu0 %v3025_v23  ;;  %2371 = vmatpush3.bf16.msra.mxu1 %v3142_v34 }
  0x40   :  { %2404 = vmatprep.subr.bf16.mxu1 %v2938_v48 }
  0x42   :  { %2383 = vmatpush1.bf16.msra.mxu0 %v3039_v31  ;;  %2026 = vmatmul.mubr.f32.vlgmr.msra.gmra.mrb[8].mxu1 %v2937_v0 }
  0x43   :  { %2385 = vmatprep.subr.bf16.mxu0 %v3042_v33  ;;  %2406 = vmatpush3.bf16.msra.mxu1 %v3045_v40 }
  0x44   :  { %2060 = vmatprep.mubr.msk.f32.mxu1 %vm2939_vm1, %v2937_v0  ;;  %2407 = vmatprep.subr.bf16.mxu1 %v2938_v48 }
  0x46   :  { %2387 = vmatpush1.bf16.msra.mxu0 %v3052_v42 }
  0x47   :  { %2389 = vmatprep.subr.bf16.mxu0 %v3055_v45  ;;  %2409 = vmatpush3.bf16.msra.mxu1 %v3061_v51 }
  0x48   :  { %2410 = vmatprep.subr.bf16.mxu1 %v2938_v48 }
  0x4a   :  { %2391 = vmatpush1.bf16.msra.mxu0 %v3068_v53 }
  0x4b   :  { %2393 = vmatprep.subr.bf16.mxu0 %v3071_v56  ;;  %2412 = vmatpush3.bf16.msra.mxu1 %v3077_v61 }
  0x4c   :  { %2413 = vmatprep.subr.bf16.mxu1 %v2938_v48 }
  0x4e   :  { %2395 = vmatpush1.bf16.msra.mxu0 %v3084_v63 }
  0x4f   :  { %2397 = vmatprep.subr.bf16.mxu0 %v3087_v3  ;;  %2415 = vmatpush3.bf16.msra.mxu1 %v3093_v8 }
  0x50   :  { %2416 = vmatprep.subr.bf16.mxu1 %v2938_v48 }
  0x52   :  { %2399 = vmatpush1.bf16.msra.mxu0 %v3100_v10 }
  0x53   :  { %2401 = vmatprep.subr.bf16.mxu0 %v3103_v14  ;;  %2418 = vmatpush3.bf16.msra.mxu1 %v3109_v19 }
  0x54   :  { %2419 = vmatprep.subr.bf16.mxu1 %v2938_v48 }
  0x56   :  { %2403 = vmatpush1.bf16.msra.mxu0 %v3116_v21 }
  0x57   :  { %2429 = vmatprep.subr.bf16.mxu0 %v3009_v12  ;;  %2421 = vmatpush3.bf16.msra.mxu1 %v3123_v26 }
  0x58   :  { %2422 = vmatprep.subr.bf16.mxu1 %v2938_v48 }
  0x5b   :  { %2424 = vmatpush3.bf16.msra.mxu1 %v3133_v29 }
  0x5c   :  { %2425 = vmatprep.subr.bf16.mxu1 %v2938_v48 }
  0x5f   :  { %2427 = vmatpush3.bf16.msra.mxu1 %v3142_v34 }
  0x60   :  { %2460 = vmatprep.subr.bf16.mxu1 %v2938_v48 }
  0xf3   :  { %v1983_v41 = vpop.f32.mrb[0].mxu1 }
  0xf4   :  { %v3183_v43 = vadd.f32 %v1983_v41, %v67_v39  ;;  %v275_v44 = vpop.f32.mrb[1].mxu1 }
  0xf5   :  { %v276_v36 = vadd.f32 %v275_v44, %v67_v39 }
  0xfb   :  { %v1986_v46 = vpop.f32.mrb[2].mxu1 }
  0xfc   :  { %v3185_v47 = vadd.f32 %v1986_v46, %v67_v39  ;;  %v285_v49 = vpop.f32.mrb[3].mxu1 }
  0xfd   :  { %v3187_v50 = vadd.f32 %v285_v49, %v67_v39 }
 0x103   :  { %v1989_v54 = vpop.f32.mrb[4].mxu1 }
 0x104   :  { %v3189_v57 = vadd.f32 %v1989_v54, %v67_v39  ;;  %v295_v58 = vpop.f32.mrb[5].mxu1 }
 0x105   :  { %v3193_v60 = vadd.f32 %v295_v58, %v67_v39 }
 0x108   :  { %v1992_v62 = vpop.f32.mrb[6].mxu1 }
 0x109   :  { %v3197_v4 = vadd.f32 %v1992_v62, %v67_v39  ;;  %v305_v5 = vpop.f32.mrb[7].mxu1 }
 0x10a   :  { %v3200_v9 = vadd.f32 %v305_v5, %v67_v39 }
 0x10c   :  { %v435_v1 = vpop.f32.mrb[0].mxu0 }
 0x10d   :  { %v2788_v6 = vadd.f32 %v435_v1, %v3191_v59  ;;  %v437_v7 = vpop.f32.mrb[1].mxu0 }
 0x10e   :  { %v2789_v13 = vadd.f32 %v437_v7, %v3195_v2 }
 0x10f   :  { %v1796_v11 = vmul.f32 -1.442695, %v2788_v6 }
 0x110   :  { %v1797_v17 = vmul.f32 -1.442695, %v2789_v13 }
 0x111   :  { %2826 = vpow2.f32 %v1796_v11 }
 0x112   :  { %2828 = vpow2.f32 %v1797_v17 }
 0x115   :  { %v506_v18 = vpop.f32.mrb[8].mxu1 }
 0x116   :  { %v2027_v20 = vpop.f32.mrb[9].mxu1  ;;  %v524_v32 = vadd.f32 %v3206_v28, %v506_v18 }
 0x11b   :  { %v2827_v24 = vpop.eup %2826 }
 0x11c   :  { %v514_v25 = vadd.f32 1.0, %v2827_v24  ;;  %v2829_v27 = vpop.eup %2828 }
 0x11d   :  { %v521_v30 = vadd.f32 1.0, %v2829_v27 }
 0x11e   :  { %2830 = vrcp.f32 %v514_v25 }
 0x11f   :  { %2832 = vrcp.f32 %v521_v30 }
 0x128   :  { %v2831_v35 = vpop.eup %2830 }
 0x129   :  { %v525_v37 = vmul.f32 %v2831_v35, %v524_v32  ;;  %v2833_v41 = vpop.eup %2832 }
 0x12a   :  { %v528_v46 = vsub.f32 1.0, %v2833_v41  ;;  %v530_v54 = vmul.f32 0.0, %v2833_v41 }
 0x12b   :  { %v526_v38 = vadd.f32 %v525_v37, %v276_v36 }
 0x12d   :  { %2834 = vtanh.f32 %v526_v38 }
 0x137   :  { %v2835_v49 = vpop.eup %2834 }
 0x138   :  { %v529_v52 = vmul.f32 %v2835_v49, %v528_v46 }
 0x13a   :  { %v531_v55 = vadd.f32 %v530_v54, %v529_v52 }
 0x13c   :  { %597 = vmatmul.mubr.f32.vlgmr.msra.gmra.mrb[2].mxu0 %v531_v55  ;;  %2061 = vmatmul.mubr.f32.vlgmr.msra.gmra.mrb[10].mxu1 %v531_v55 }
 0x13d   :  { %2431 = vmatpush1.bf16.msra.mxu0 %v3011_v15  ;;  %2462 = vmatpush3.bf16.msra.mxu1 %v3045_v40 }
 0x13e   :  { %2433 = vmatprep.subr.bf16.mxu0 %v3014_v16  ;;  %2463 = vmatprep.subr.bf16.mxu1 %v2938_v48 }
 0x13f   :  { %759 = vmatprep.mubr.f32.mxu0 %v2937_v0  ;;  %2095 = vmatprep.mubr.msk.f32.mxu1 %vm2939_vm1, %v2937_v0 }
 0x141   :  { %2435 = vmatpush1.bf16.msra.mxu0 %v3022_v22  ;;  %2465 = vmatpush3.bf16.msra.mxu1 %v3061_v51 }
 0x142   :  { %2437 = vmatprep.subr.bf16.mxu0 %v3025_v23  ;;  %2466 = vmatprep.subr.bf16.mxu1 %v2938_v48 }
 0x145   :  { %2439 = vmatpush1.bf16.msra.mxu0 %v3039_v31  ;;  %2468 = vmatpush3.bf16.msra.mxu1 %v3077_v61 }
 0x146   :  { %2441 = vmatprep.subr.bf16.mxu0 %v3042_v33  ;;  %2469 = vmatprep.subr.bf16.mxu1 %v2938_v48 }
 0x149   :  { %2443 = vmatpush1.bf16.msra.mxu0 %v3052_v42  ;;  %2471 = vmatpush3.bf16.msra.mxu1 %v3093_v8 }
 0x14a   :  { %2445 = vmatprep.subr.bf16.mxu0 %v3055_v45  ;;  %2472 = vmatprep.subr.bf16.mxu1 %v2938_v48 }
 0x14d   :  { %2447 = vmatpush1.bf16.msra.mxu0 %v3068_v53  ;;  %2474 = vmatpush3.bf16.msra.mxu1 %v3109_v19 }
 0x14e   :  { %2449 = vmatprep.subr.bf16.mxu0 %v3071_v56  ;;  %2475 = vmatprep.subr.bf16.mxu1 %v2938_v48 }
 0x151   :  { %2451 = vmatpush1.bf16.msra.mxu0 %v3084_v63  ;;  %2477 = vmatpush3.bf16.msra.mxu1 %v3123_v26 }
 0x152   :  { %2453 = vmatprep.subr.bf16.mxu0 %v3087_v3  ;;  %2478 = vmatprep.subr.bf16.mxu1 %v2938_v48 }
 0x155   :  { %2455 = vmatpush1.bf16.msra.mxu0 %v3100_v10  ;;  %2480 = vmatpush3.bf16.msra.mxu1 %v3133_v29 }
 0x156   :  { %2457 = vmatprep.subr.bf16.mxu0 %v3103_v14  ;;  %2481 = vmatprep.subr.bf16.mxu1 %v2938_v48 }
 0x159   :  { %2459 = vmatpush1.bf16.msra.mxu0 %v3116_v21  ;;  %2483 = vmatpush3.bf16.msra.mxu1 %v3142_v34 }
 0x15a   :  { %2485 = vmatprep.subr.bf16.mxu0 %v3009_v12  ;;  %2516 = vmatprep.subr.bf16.mxu1 %v2938_v48 }
 0x20f   :  { %v598_v39 = vpop.f32.mrb[2].mxu0  ;;  %v669_v44 = vpop.f32.mrb[10].mxu1 }
 0x210   :  { %v2790_v58 = vadd.f32 %v598_v39, %v3191_v59  ;;  %v600_v62 = vpop.f32.mrb[3].mxu0  ;;  %v2062_v1 = vpop.f32.mrb[11].mxu1  ;;  %v687_v20 = vadd.f32 %v3206_v28, %v669_v44 }
 0x211   :  { %v2791_v6 = vadd.f32 %v600_v62, %v3195_v2 }
 0x212   :  { %v1798_v5 = vmul.f32 -1.442695, %v2790_v58 }
 0x213   :  { %v1799_v7 = vmul.f32 -1.442695, %v2791_v6 }
 0x214   :  { %2836 = vpow2.f32 %v1798_v5 }
 0x215   :  { %2838 = vpow2.f32 %v1799_v7 }
 0x21e   :  { %v2837_v11 = vpop.eup %2836 }
 0x21f   :  { %v677_v13 = vadd.f32 1.0, %v2837_v11  ;;  %v2839_v17 = vpop.eup %2838 }
 0x220   :  { %v684_v18 = vadd.f32 1.0, %v2839_v17 }
 0x221   :  { %2840 = vrcp.f32 %v677_v13 }
 0x222   :  { %2842 = vrcp.f32 %v684_v18 }
 0x22b   :  { %v2841_v24 = vpop.eup %2840 }
 0x22c   :  { %v688_v25 = vmul.f32 %v2841_v24, %v687_v20  ;;  %v2843_v30 = vpop.eup %2842 }
 0x22d   :  { %v691_v32 = vsub.f32 1.0, %v2843_v30  ;;  %v693_v37 = vmul.f32 %v2843_v30, %v531_v55 }
 0x22e   :  { %v689_v27 = vadd.f32 %v688_v25, %v3183_v43 }
 0x230   :  { %2844 = vtanh.f32 %v689_v27 }
 0x23a   :  { %v2845_v35 = vpop.eup %2844 }
 0x23b   :  { %v692_v36 = vmul.f32 %v2845_v35, %v691_v32 }
 0x23d   :  { %v694_v38 = vadd.f32 %v693_v37, %v692_v36 }
 0x23f   :  { %760 = vmatmul.mubr.f32.vlgmr.msra.gmra.mrb[4].mxu0 %v694_v38  ;;  %2096 = vmatmul.mubr.f32.vlgmr.msra.gmra.mrb[12].mxu1 %v694_v38 }
 0x240   :  { %2487 = vmatpush1.bf16.msra.mxu0 %v3011_v15  ;;  %2518 = vmatpush3.bf16.msra.mxu1 %v3045_v40 }
 0x241   :  { %2489 = vmatprep.subr.bf16.mxu0 %v3014_v16  ;;  %2519 = vmatprep.subr.bf16.mxu1 %v2938_v48 }
 0x242   :  { %922 = vmatprep.mubr.f32.mxu0 %v2937_v0  ;;  %2130 = vmatprep.mubr.msk.f32.mxu1 %vm2939_vm1, %v2937_v0 }
 0x244   :  { %2491 = vmatpush1.bf16.msra.mxu0 %v3022_v22  ;;  %2521 = vmatpush3.bf16.msra.mxu1 %v3061_v51 }
 0x245   :  { %2493 = vmatprep.subr.bf16.mxu0 %v3025_v23  ;;  %2522 = vmatprep.subr.bf16.mxu1 %v2938_v48 }
 0x248   :  { %2495 = vmatpush1.bf16.msra.mxu0 %v3039_v31  ;;  %2524 = vmatpush3.bf16.msra.mxu1 %v3077_v61 }
 0x249   :  { %2497 = vmatprep.subr.bf16.mxu0 %v3042_v33  ;;  %2525 = vmatprep.subr.bf16.mxu1 %v2938_v48 }
 0x24c   :  { %2499 = vmatpush1.bf16.msra.mxu0 %v3052_v42  ;;  %2527 = vmatpush3.bf16.msra.mxu1 %v3093_v8 }
 0x24d   :  { %2501 = vmatprep.subr.bf16.mxu0 %v3055_v45  ;;  %2528 = vmatprep.subr.bf16.mxu1 %v2938_v48 }
 0x250   :  { %2503 = vmatpush1.bf16.msra.mxu0 %v3068_v53  ;;  %2530 = vmatpush3.bf16.msra.mxu1 %v3109_v19 }
 0x251   :  { %2505 = vmatprep.subr.bf16.mxu0 %v3071_v56  ;;  %2531 = vmatprep.subr.bf16.mxu1 %v2938_v48 }
 0x254   :  { %2507 = vmatpush1.bf16.msra.mxu0 %v3084_v63  ;;  %2533 = vmatpush3.bf16.msra.mxu1 %v3123_v26 }
 0x255   :  { %2509 = vmatprep.subr.bf16.mxu0 %v3087_v3  ;;  %2534 = vmatprep.subr.bf16.mxu1 %v2938_v48 }
 0x258   :  { %2511 = vmatpush1.bf16.msra.mxu0 %v3100_v10  ;;  %2536 = vmatpush3.bf16.msra.mxu1 %v3133_v29 }
 0x259   :  { %2513 = vmatprep.subr.bf16.mxu0 %v3103_v14  ;;  %2537 = vmatprep.subr.bf16.mxu1 %v2938_v48 }
 0x25c   :  { %2515 = vmatpush1.bf16.msra.mxu0 %v3116_v21  ;;  %2539 = vmatpush3.bf16.msra.mxu1 %v3142_v34 }
 0x25d   :  { %2541 = vmatprep.subr.bf16.mxu0 %v3009_v12  ;;  %2572 = vmatprep.subr.bf16.mxu1 %v2938_v48 }
 0x312   :  { %v761_v43 = vpop.f32.mrb[4].mxu0  ;;  %v832_v41 = vpop.f32.mrb[12].mxu1 }
 0x313   :  { %v2792_v46 = vadd.f32 %v761_v43, %v3191_v59  ;;  %v763_v49 = vpop.f32.mrb[5].mxu0  ;;  %v2097_v52 = vpop.f32.mrb[13].mxu1  ;;  %v850_v5 = vadd.f32 %v3206_v28, %v832_v41 }
 0x314   :  { %v2793_v55 = vadd.f32 %v763_v49, %v3195_v2 }
 0x315   :  { %v1800_v54 = vmul.f32 -1.442695, %v2792_v46 }
 0x316   :  { %v1801_v39 = vmul.f32 -1.442695, %v2793_v55 }
 0x317   :  { %2846 = vpow2.f32 %v1800_v54 }
 0x318   :  { %2848 = vpow2.f32 %v1801_v39 }
 0x321   :  { %v2847_v44 = vpop.eup %2846 }
 0x322   :  { %v840_v58 = vadd.f32 1.0, %v2847_v44  ;;  %v2849_v62 = vpop.eup %2848 }
 0x323   :  { %v847_v1 = vadd.f32 1.0, %v2849_v62 }
 0x324   :  { %2850 = vrcp.f32 %v840_v58 }
 0x325   :  { %2852 = vrcp.f32 %v847_v1 }
 0x32e   :  { %v2851_v6 = vpop.eup %2850 }
 0x32f   :  { %v851_v7 = vmul.f32 %v2851_v6, %v850_v5  ;;  %v2853_v13 = vpop.eup %2852 }
 0x330   :  { %v854_v17 = vsub.f32 1.0, %v2853_v13  ;;  %v856_v24 = vmul.f32 %v2853_v13, %v694_v38 }
 0x331   :  { %v852_v11 = vadd.f32 %v851_v7, %v3187_v50 }
 0x333   :  { %2854 = vtanh.f32 %v852_v11 }
 0x33d   :  { %v2855_v18 = vpop.eup %2854 }
 0x33e   :  { %v855_v20 = vmul.f32 %v2855_v18, %v854_v17 }
 0x340   :  { %v857_v25 = vadd.f32 %v856_v24, %v855_v20 }
 0x342   :  { %923 = vmatmul.mubr.f32.vlgmr.msra.gmra.mrb[6].mxu0 %v857_v25  ;;  %2131 = vmatmul.mubr.f32.vlgmr.msra.gmra.mrb[14].mxu1 %v857_v25 }
 0x343   :  { %2543 = vmatpush1.bf16.msra.mxu0 %v3011_v15  ;;  %2574 = vmatpush3.bf16.msra.mxu1 %v3045_v40 }
 0x344   :  { %2545 = vmatprep.subr.bf16.mxu0 %v3014_v16  ;;  %2575 = vmatprep.subr.bf16.mxu1 %v2938_v48 }
 0x345   :  { %1085 = vmatprep.mubr.f32.mxu0 %v2937_v0  ;;  %2165 = vmatprep.mubr.msk.f32.mxu1 %vm2939_vm1, %v2937_v0 }
 0x347   :  { %2547 = vmatpush1.bf16.msra.mxu0 %v3022_v22  ;;  %2577 = vmatpush3.bf16.msra.mxu1 %v3061_v51 }
 0x348   :  { %2549 = vmatprep.subr.bf16.mxu0 %v3025_v23  ;;  %2578 = vmatprep.subr.bf16.mxu1 %v2938_v48 }
 0x34b   :  { %2551 = vmatpush1.bf16.msra.mxu0 %v3039_v31  ;;  %2580 = vmatpush3.bf16.msra.mxu1 %v3077_v61 }
 0x34c   :  { %2553 = vmatprep.subr.bf16.mxu0 %v3042_v33  ;;  %2581 = vmatprep.subr.bf16.mxu1 %v2938_v48 }
 0x34f   :  { %2555 = vmatpush1.bf16.msra.mxu0 %v3052_v42  ;;  %2583 = vmatpush3.bf16.msra.mxu1 %v3093_v8 }
 0x350   :  { %2557 = vmatprep.subr.bf16.mxu0 %v3055_v45  ;;  %2584 = vmatprep.subr.bf16.mxu1 %v2938_v48 }
 0x353   :  { %2559 = vmatpush1.bf16.msra.mxu0 %v3068_v53  ;;  %2586 = vmatpush3.bf16.msra.mxu1 %v3109_v19 }
 0x354   :  { %2561 = vmatprep.subr.bf16.mxu0 %v3071_v56  ;;  %2587 = vmatprep.subr.bf16.mxu1 %v2938_v48 }
 0x357   :  { %2563 = vmatpush1.bf16.msra.mxu0 %v3084_v63  ;;  %2589 = vmatpush3.bf16.msra.mxu1 %v3123_v26 }
 0x358   :  { %2565 = vmatprep.subr.bf16.mxu0 %v3087_v3  ;;  %2590 = vmatprep.subr.bf16.mxu1 %v2938_v48 }
 0x35b   :  { %2567 = vmatpush1.bf16.msra.mxu0 %v3100_v10  ;;  %2592 = vmatpush3.bf16.msra.mxu1 %v3133_v29 }
 0x35c   :  { %2569 = vmatprep.subr.bf16.mxu0 %v3103_v14  ;;  %2593 = vmatprep.subr.bf16.mxu1 %v2938_v48 }
 0x35f   :  { %2571 = vmatpush1.bf16.msra.mxu0 %v3116_v21  ;;  %2595 = vmatpush3.bf16.msra.mxu1 %v3142_v34 }
 0x360   :  { %2597 = vmatprep.subr.bf16.mxu0 %v3009_v12  ;;  %2628 = vmatprep.subr.bf16.mxu1 %v2938_v48 }
 0x415   :  { %v924_v50 = vpop.f32.mrb[6].mxu0  ;;  %v995_v27 = vpop.f32.mrb[14].mxu1 }
 0x416   :  { %v2794_v30 = vadd.f32 %v924_v50, %v3191_v59  ;;  %v926_v32 = vpop.f32.mrb[7].mxu0  ;;  %v2132_v35 = vpop.f32.mrb[15].mxu1  ;;  %v1013_v52 = vadd.f32 %v3206_v28, %v995_v27 }
 0x417   :  { %v2795_v37 = vadd.f32 %v926_v32, %v3195_v2 }
 0x418   :  { %v1802_v36 = vmul.f32 -1.442695, %v2794_v30 }
 0x419   :  { %v1803_v38 = vmul.f32 -1.442695, %v2795_v37 }
 0x41a   :  { %2856 = vpow2.f32 %v1802_v36 }
 0x41b   :  { %2858 = vpow2.f32 %v1803_v38 }
 0x424   :  { %v2857_v43 = vpop.eup %2856 }
 0x425   :  { %v1003_v41 = vadd.f32 1.0, %v2857_v43  ;;  %v2859_v46 = vpop.eup %2858 }
 0x426   :  { %v1010_v49 = vadd.f32 1.0, %v2859_v46 }
 0x427   :  { %2860 = vrcp.f32 %v1003_v41 }
 0x428   :  { %2862 = vrcp.f32 %v1010_v49 }
 0x431   :  { %v2861_v54 = vpop.eup %2860 }
 0x432   :  { %v1014_v55 = vmul.f32 %v2861_v54, %v1013_v52  ;;  %v2863_v44 = vpop.eup %2862 }
 0x433   :  { %v1017_v58 = vsub.f32 1.0, %v2863_v44  ;;  %v1019_v5 = vmul.f32 %v2863_v44, %v857_v25 }
 0x434   :  { %v1015_v39 = vadd.f32 %v1014_v55, %v3185_v47 }
 0x436   :  { %2864 = vtanh.f32 %v1015_v39 }
 0x440   :  { %v2865_v62 = vpop.eup %2864 }
 0x441   :  { %v1018_v1 = vmul.f32 %v2865_v62, %v1017_v58 }
 0x443   :  { %v1020_v6 = vadd.f32 %v1019_v5, %v1018_v1 }
 0x445   :  { %1086 = vmatmul.mubr.f32.vlgmr.msra.gmra.mrb[8].mxu0 %v1020_v6  ;;  %2166 = vmatmul.mubr.f32.vlgmr.msra.gmra.mrb[16].mxu1 %v1020_v6 }
 0x446   :  { %2599 = vmatpush1.bf16.msra.mxu0 %v3011_v15  ;;  %2630 = vmatpush3.bf16.msra.mxu1 %v3045_v40 }
 0x447   :  { %2601 = vmatprep.subr.bf16.mxu0 %v3014_v16  ;;  %2631 = vmatprep.subr.bf16.mxu1 %v2938_v48 }
 0x448   :  { %1248 = vmatprep.mubr.f32.mxu0 %v2937_v0  ;;  %2200 = vmatprep.mubr.msk.f32.mxu1 %vm2939_vm1, %v2937_v0 }
 0x44a   :  { %2603 = vmatpush1.bf16.msra.mxu0 %v3022_v22  ;;  %2633 = vmatpush3.bf16.msra.mxu1 %v3061_v51 }
 0x44b   :  { %2605 = vmatprep.subr.bf16.mxu0 %v3025_v23  ;;  %2634 = vmatprep.subr.bf16.mxu1 %v2938_v48 }
 0x44e   :  { %2607 = vmatpush1.bf16.msra.mxu0 %v3039_v31  ;;  %2636 = vmatpush3.bf16.msra.mxu1 %v3077_v61 }
 0x44f   :  { %2609 = vmatprep.subr.bf16.mxu0 %v3042_v33  ;;  %2637 = vmatprep.subr.bf16.mxu1 %v2938_v48 }
 0x452   :  { %2611 = vmatpush1.bf16.msra.mxu0 %v3052_v42  ;;  %2639 = vmatpush3.bf16.msra.mxu1 %v3093_v8 }
 0x453   :  { %2613 = vmatprep.subr.bf16.mxu0 %v3055_v45  ;;  %2640 = vmatprep.subr.bf16.mxu1 %v2938_v48 }
 0x456   :  { %2615 = vmatpush1.bf16.msra.mxu0 %v3068_v53  ;;  %2642 = vmatpush3.bf16.msra.mxu1 %v3109_v19 }
 0x457   :  { %2617 = vmatprep.subr.bf16.mxu0 %v3071_v56  ;;  %2643 = vmatprep.subr.bf16.mxu1 %v2938_v48 }
 0x45a   :  { %2619 = vmatpush1.bf16.msra.mxu0 %v3084_v63  ;;  %2645 = vmatpush3.bf16.msra.mxu1 %v3123_v26 }
 0x45b   :  { %2621 = vmatprep.subr.bf16.mxu0 %v3087_v3  ;;  %2646 = vmatprep.subr.bf16.mxu1 %v2938_v48 }
 0x45e   :  { %2623 = vmatpush1.bf16.msra.mxu0 %v3100_v10  ;;  %2648 = vmatpush3.bf16.msra.mxu1 %v3133_v29 }
 0x45f   :  { %2625 = vmatprep.subr.bf16.mxu0 %v3103_v14  ;;  %2649 = vmatprep.subr.bf16.mxu1 %v2938_v48 }
 0x462   :  { %2627 = vmatpush1.bf16.msra.mxu0 %v3116_v21  ;;  %2651 = vmatpush3.bf16.msra.mxu1 %v3142_v34 }
 0x463   :  { %2653 = vmatprep.subr.bf16.mxu0 %v3009_v12  ;;  %2684 = vmatprep.subr.bf16.mxu1 %v2938_v48 }
 0x518   :  { %v1087_v47 = vpop.f32.mrb[8].mxu0  ;;  %v1158_v7 = vpop.f32.mrb[16].mxu1 }
 0x519   :  { %v2796_v11 = vadd.f32 %v1087_v47, %v3191_v59  ;;  %v1089_v13 = vpop.f32.mrb[9].mxu0  ;;  %v2167_v17 = vpop.f32.mrb[17].mxu1  ;;  %v1176_v32 = vadd.f32 %v3206_v28, %v1158_v7 }
 0x51a   :  { %v2797_v20 = vadd.f32 %v1089_v13, %v3195_v2 }
 0x51b   :  { %v1804_v18 = vmul.f32 -1.442695, %v2796_v11 }
 0x51c   :  { %v1805_v24 = vmul.f32 -1.442695, %v2797_v20 }
 0x51d   :  { %2866 = vpow2.f32 %v1804_v18 }
 0x51e   :  { %2868 = vpow2.f32 %v1805_v24 }
 0x527   :  { %v2867_v25 = vpop.eup %2866 }
 0x528   :  { %v1166_v50 = vadd.f32 1.0, %v2867_v25  ;;  %v2869_v27 = vpop.eup %2868 }
 0x529   :  { %v1173_v30 = vadd.f32 1.0, %v2869_v27 }
 0x52a   :  { %2870 = vrcp.f32 %v1166_v50 }
 0x52b   :  { %2872 = vrcp.f32 %v1173_v30  ;;  %v1675_v30 = vld [vmem:[%s3519_s5 + $0x10] sm:$0xff] }
 0x534   :  { %v2871_v35 = vpop.eup %2870 }
 0x535   :  { %v1177_v36 = vmul.f32 %v2871_v35, %v1176_v32  ;;  %v2873_v38 = vpop.eup %2872  ;;  %v1677_v35 = vld [vmem:[%s3519_s5 + $0x20] sm:$0xff] }
 0x536   :  { %v1180_v43 = vsub.f32 1.0, %v2873_v38  ;;  %v1182_v49 = vmul.f32 %v2873_v38, %v1020_v6  ;;  %v1679_v38 = vld [vmem:[%s3519_s5 + $0x30] sm:$0xff] }
 0x537   :  { %v1178_v37 = vadd.f32 %v1177_v36, %v3193_v60  ;;  %v1678_v36 = vld [vmem:[%s3519_s5 + $0x28] sm:$0xff] }
 0x539   :  { %2874 = vtanh.f32 %v1178_v37  ;;  %v2771_v37 = vpack.c.bf16 %v1678_v36, %v1677_v35 }
 0x543   :  { %v2875_v41 = vpop.eup %2874 }
 0x544   :  { %v1181_v46 = vmul.f32 %v2875_v41, %v1180_v43  ;;  %v1680_v43 = vld [vmem:[%s3519_s5 + $0x38] sm:$0xff] }
 0x545   :  { %v2774_v41 = vpack.c.bf16 %v1680_v43, %v1679_v38 }
 0x546   :  { %v1183_v52 = vadd.f32 %v1182_v49, %v1181_v46  ;;  %v1681_v46 = vld [vmem:[%s3519_s5 + $0x40] sm:$0xff]  ;;  %v1682_v49 = vld [vmem:[%s3519_s5 + $0x48] sm:$0xff] }
 0x548   :  { %1249 = vmatmul.mubr.f32.vlgmr.msra.gmra.mrb[10].mxu0 %v1183_v52  ;;  %2201 = vmatmul.mubr.f32.vlgmr.msra.gmra.mrb[18].mxu1 %v1183_v52 }
 0x549   :  { %2655 = vmatpush1.bf16.msra.mxu0 %v3011_v15  ;;  %2686 = vmatpush3.bf16.msra.mxu1 %v3045_v40 }
 0x54a   :  { %2657 = vmatprep.subr.bf16.mxu0 %v3014_v16  ;;  %2687 = vmatprep.subr.bf16.mxu1 %v2938_v48 }
 0x54b   :  { %1411 = vmatprep.mubr.f32.mxu0 %v2937_v0  ;;  %2235 = vmatprep.mubr.msk.f32.mxu1 %vm2939_vm1, %v2937_v0 }
 0x54d   :  { %2659 = vmatpush1.bf16.msra.mxu0 %v3022_v22  ;;  %2689 = vmatpush3.bf16.msra.mxu1 %v3061_v51 }
 0x54e   :  { %2661 = vmatprep.subr.bf16.mxu0 %v3025_v23  ;;  %2690 = vmatprep.subr.bf16.mxu1 %v2938_v48 }
 0x551   :  { %2663 = vmatpush1.bf16.msra.mxu0 %v3039_v31  ;;  %2692 = vmatpush3.bf16.msra.mxu1 %v3077_v61 }
 0x552   :  { %2665 = vmatprep.subr.bf16.mxu0 %v3042_v33  ;;  %2693 = vmatprep.subr.bf16.mxu1 %v2938_v48 }
 0x555   :  { %2667 = vmatpush1.bf16.msra.mxu0 %v3052_v42  ;;  %2695 = vmatpush3.bf16.msra.mxu1 %v3093_v8 }
 0x556   :  { %2669 = vmatprep.subr.bf16.mxu0 %v3055_v45  ;;  %2696 = vmatprep.subr.bf16.mxu1 %v2938_v48 }
 0x559   :  { %2671 = vmatpush1.bf16.msra.mxu0 %v3068_v53  ;;  %2698 = vmatpush3.bf16.msra.mxu1 %v3109_v19 }
 0x55a   :  { %2673 = vmatprep.subr.bf16.mxu0 %v3071_v56  ;;  %2699 = vmatprep.subr.bf16.mxu1 %v2938_v48 }
 0x55d   :  { %2675 = vmatpush1.bf16.msra.mxu0 %v3084_v63  ;;  %2701 = vmatpush3.bf16.msra.mxu1 %v3123_v26 }
 0x55e   :  { %2677 = vmatprep.subr.bf16.mxu0 %v3087_v3  ;;  %2702 = vmatprep.subr.bf16.mxu1 %v2938_v48 }
 0x561   :  { %2679 = vmatpush1.bf16.msra.mxu0 %v3100_v10  ;;  %2704 = vmatpush3.bf16.msra.mxu1 %v3133_v29 }
 0x562   :  { %2681 = vmatprep.subr.bf16.mxu0 %v3103_v14  ;;  %2705 = vmatprep.subr.bf16.mxu1 %v2938_v48 }
 0x565   :  { %2683 = vmatpush1.bf16.msra.mxu0 %v3116_v21  ;;  %2707 = vmatpush3.bf16.msra.mxu1 %v3142_v34 }
 0x566   :  { %2709 = vmatprep.subr.bf16.mxu0 %v3009_v12  ;;  %2740 = vmatprep.subr.bf16.mxu1 %v2938_v48 }
 0x61b   :  { %v1250_v60 = vpop.f32.mrb[10].mxu0  ;;  %v1321_v54 = vpop.f32.mrb[18].mxu1 }
 0x61c   :  { %v2798_v55 = vadd.f32 %v1250_v60, %v3191_v59  ;;  %v1252_v39 = vpop.f32.mrb[11].mxu0  ;;  %v2202_v44 = vpop.f32.mrb[19].mxu1  ;;  %v1339_v12 = vadd.f32 %v3206_v28, %v1321_v54  ;;  %v1683_v60 = vld [vmem:[%s3519_s5 + $0x50] sm:$0xff]  ;;  %v1684_v54 = vld [vmem:[%s3519_s5 + $0x58] sm:$0xff] }
 0x61d   :  { %v2799_v62 = vadd.f32 %v1252_v39, %v3195_v2  ;;  %v1685_v39 = vld [vmem:[%s3519_s5 + $0x60] sm:$0xff]  ;;  %v1686_v44 = vld [vmem:[%s3519_s5 + $0x68] sm:$0xff] }
 0x61e   :  { %v1806_v58 = vmul.f32 -1.442695, %v2798_v55  ;;  %v2780_v55 = vpack.c.bf16 %v1684_v54, %v1683_v60 }
 0x61f   :  { %v1807_v1 = vmul.f32 -1.442695, %v2799_v62  ;;  %v1687_v62 = vld [vmem:[%s3519_s5 + $0x70] sm:$0xff] }
 0x620   :  { %2876 = vpow2.f32 %v1806_v58  ;;  %v2783_v58 = vpack.c.bf16 %v1686_v44, %v1685_v39 }
 0x621   :  { %2878 = vpow2.f32 %v1807_v1  ;;  %v1688_v1 = vld [vmem:[%s3519_s5 + $0x78] sm:$0xff] }
 0x62a   :  { %v2877_v5 = vpop.eup %2876 }
 0x62b   :  { %v1329_v6 = vadd.f32 1.0, %v2877_v5  ;;  %v2879_v47 = vpop.eup %2878  ;;  %v2786_v5 = vpack.c.bf16 %v1688_v1, %v1687_v62 }
 0x62c   :  { %v1336_v7 = vadd.f32 1.0, %v2879_v47 }
 0x62d   :  { %2880 = vrcp.f32 %v1329_v6 }
 0x62e   :  { %2882 = vrcp.f32 %v1336_v7 }
 0x637   :  { %v2881_v11 = vpop.eup %2880 }
 0x638   :  { %v1340_v13 = vmul.f32 %v2881_v11, %v1339_v12  ;;  %v2883_v18 = vpop.eup %2882 }
 0x639   :  { %v1343_v20 = vsub.f32 1.0, %v2883_v18  ;;  %v1345_v50 = vmul.f32 %v2883_v18, %v1183_v52  ;;  %v2777_v52 = vpack.c.bf16 %v1682_v49, %v1681_v46 }
 0x63a   :  { %v1341_v17 = vadd.f32 %v1340_v13, %v3189_v57  ;;  %v1674_v57 = vld [vmem:[%s3519_s5 + $0x8] sm:$0xff] }
 0x63c   :  { %2884 = vtanh.f32 %v1341_v17 }
 0x646   :  { %v2885_v24 = vpop.eup %2884 }
 0x647   :  { %v1344_v25 = vmul.f32 %v2885_v24, %v1343_v20 }
 0x649   :  { %v1346_v27 = vadd.f32 %v1345_v50, %v1344_v25 }
 0x64b   :  { %1412 = vmatmul.mubr.f32.vlgmr.msra.gmra.mrb[12].mxu0 %v1346_v27  ;;  %2236 = vmatmul.mubr.f32.vlgmr.msra.gmra.mrb[20].mxu1 %v1346_v27 }
 0x64c   :  { %2711 = vmatpush1.bf16.msra.mxu0 %v3011_v15  ;;  %2742 = vmatpush3.bf16.msra.mxu1 %v3045_v40 }
 0x64d   :  { %2713 = vmatprep.subr.bf16.mxu0 %v3014_v16  ;;  %2743 = vmatprep.subr.bf16.mxu1 %v2938_v48 }
 0x64e   :  { %1574 = vmatprep.mubr.f32.mxu0 %v2937_v0  ;;  %2270 = vmatprep.mubr.msk.f32.mxu1 %vm2939_vm1, %v2937_v0 }
 0x650   :  { %2715 = vmatpush1.bf16.msra.mxu0 %v3022_v22  ;;  %2745 = vmatpush3.bf16.msra.mxu1 %v3061_v51 }
 0x651   :  { %2717 = vmatprep.subr.bf16.mxu0 %v3025_v23  ;;  %2746 = vmatprep.subr.bf16.mxu1 %v2938_v48 }
 0x654   :  { %2719 = vmatpush1.bf16.msra.mxu0 %v3039_v31  ;;  %2748 = vmatpush3.bf16.msra.mxu1 %v3077_v61 }
 0x655   :  { %2721 = vmatprep.subr.bf16.mxu0 %v3042_v33  ;;  %2749 = vmatprep.subr.bf16.mxu1 %v2938_v48 }
 0x658   :  { %2723 = vmatpush1.bf16.msra.mxu0 %v3052_v42  ;;  %2751 = vmatpush3.bf16.msra.mxu1 %v3093_v8 }
 0x659   :  { %2725 = vmatprep.subr.bf16.mxu0 %v3055_v45  ;;  %2752 = vmatprep.subr.bf16.mxu1 %v2938_v48 }
 0x65c   :  { %2727 = vmatpush1.bf16.msra.mxu0 %v3068_v53  ;;  %2754 = vmatpush3.bf16.msra.mxu1 %v3109_v19 }
 0x65d   :  { %2729 = vmatprep.subr.bf16.mxu0 %v3071_v56  ;;  %2755 = vmatprep.subr.bf16.mxu1 %v2938_v48 }
 0x660   :  { %2731 = vmatpush1.bf16.msra.mxu0 %v3084_v63  ;;  %2757 = vmatpush3.bf16.msra.mxu1 %v3123_v26 }
 0x661   :  { %2733 = vmatprep.subr.bf16.mxu0 %v3087_v3  ;;  %2758 = vmatprep.subr.bf16.mxu1 %v2938_v48 }
 0x664   :  { %2735 = vmatpush1.bf16.msra.mxu0 %v3100_v10  ;;  %2760 = vmatpush3.bf16.msra.mxu1 %v3133_v29 }
 0x665   :  { %2737 = vmatprep.subr.bf16.mxu0 %v3103_v14  ;;  %2761 = vmatprep.subr.bf16.mxu1 %v2938_v48 }
 0x668   :  { %2739 = vmatpush1.bf16.msra.mxu0 %v3116_v21  ;;  %2763 = vmatpush3.bf16.msra.mxu1 %v3142_v34  ;;  %v1673_v34 = vld [vmem:[%s3519_s5] sm:$0xff] }
 0x669   :  { %2764 = vmatprep.subr.bf16.mxu0 %v2938_v48 }
 0x71e   :  { %v1413_v15 = vpop.f32.mrb[12].mxu0  ;;  %v1484_v16 = vpop.f32.mrb[20].mxu1 }
 0x71f   :  { %v2800_v22 = vadd.f32 %v1413_v15, %v3191_v59  ;;  %v1415_v23 = vpop.f32.mrb[13].mxu0  ;;  %v2237_v31 = vpop.f32.mrb[21].mxu1  ;;  %v1502_v61 = vadd.f32 %v3206_v28, %v1484_v16 }
 0x720   :  { %v2801_v40 = vadd.f32 %v1415_v23, %v3195_v2 }
 0x721   :  { %v1808_v33 = vmul.f32 -1.442695, %v2800_v22 }
 0x722   :  { %v1809_v42 = vmul.f32 -1.442695, %v2801_v40  ;;  %v1812_v40 = vld [vmem:[%s3520_s6] ss:$0 sm:$0xff] }
 0x723   :  { %2886 = vpow2.f32 %v1808_v33 }
 0x724   :  { %2888 = vpow2.f32 %v1809_v42 }
 0x72d   :  { %v2887_v45 = vpop.eup %2886 }
 0x72e   :  { %v1492_v51 = vadd.f32 1.0, %v2887_v45  ;;  %v2889_v53 = vpop.eup %2888 }
 0x72f   :  { %v1499_v56 = vadd.f32 1.0, %v2889_v53 }
 0x730   :  { %2890 = vrcp.f32 %v1492_v51 }
 0x731   :  { %2892 = vrcp.f32 %v1499_v56 }
 0x73a   :  { %v2891_v63 = vpop.eup %2890 }
 0x73b   :  { %v1503_v3 = vmul.f32 %v2891_v63, %v1502_v61  ;;  %v2893_v10 = vpop.eup %2892 }
 0x73c   :  { %v1506_v14 = vsub.f32 1.0, %v2893_v10  ;;  %v1508_v26 = vmul.f32 %v2893_v10, %v1346_v27 }
 0x73d   :  { %v1504_v8 = vadd.f32 %v1503_v3, %v3200_v9  ;;  %v2765_v9 = vpack.c.bf16 %v1674_v57, %v1673_v34 }
 0x73f   :  { %2894 = vtanh.f32 %v1504_v8 }
 0x749   :  { %v2895_v19 = vpop.eup %2894 }
 0x74a   :  { %v1507_v21 = vmul.f32 %v2895_v19, %v1506_v14 }
 0x74c   :  { %v3442_v29 = vadd.f32 %v1508_v26, %v1507_v21 }
 0x74e   :  { %1575 = vmatmul.mubr.f32.vlgmr.msra.gmra.mrb[14].mxu0 %v3442_v29  ;;  %2271 = vmatmul.mubr.f32.vlgmr.msra.gmra.mrb[22].mxu1 %v3442_v29 }
 0x74f   :  { %2305 = vmatprep.mubr.msk.f32.mxu0 %vm2939_vm1, %v2937_v0  ;;  %2766 = vmatpush3.bf16.msra.mxu0 %v2765_v9  ;;  %v1676_v0 = vld [vmem:[%s3519_s5 + $0x18] sm:$0xff] }
 0x750   :  { %2767 = vmatprep.subr.bf16.mxu0 %v2938_v48  ;;  %v2768_v32 = vpack.c.bf16 %v1676_v0, %v1675_v30 }
 0x753   :  { %2769 = vmatpush3.bf16.msra.mxu0 %v2768_v32 }
 0x754   :  { %2770 = vmatprep.subr.bf16.mxu0 %v2938_v48 }
 0x757   :  { %2772 = vmatpush3.bf16.msra.mxu0 %v2771_v37 }
 0x758   :  { %2773 = vmatprep.subr.bf16.mxu0 %v2938_v48 }
 0x75b   :  { %2775 = vmatpush3.bf16.msra.mxu0 %v2774_v41 }
 0x75c   :  { %2776 = vmatprep.subr.bf16.mxu0 %v2938_v48 }
 0x75f   :  { %2778 = vmatpush3.bf16.msra.mxu0 %v2777_v52 }
 0x760   :  { %2779 = vmatprep.subr.bf16.mxu0 %v2938_v48 }
 0x763   :  { %2781 = vmatpush3.bf16.msra.mxu0 %v2780_v55 }
 0x764   :  { %2782 = vmatprep.subr.bf16.mxu0 %v2938_v48 }
 0x767   :  { %2784 = vmatpush3.bf16.msra.mxu0 %v2783_v58 }
 0x768   :  { %2785 = vmatprep.subr.bf16.mxu0 %v2938_v48 }
 0x76b   :  { %2787 = vmatpush3.bf16.msra.mxu0 %v2786_v5 }
 0x821   :  { %v1576_v6 = vpop.f32.mrb[14].mxu0  ;;  %v1647_v47 = vpop.f32.mrb[22].mxu1 }
 0x822   :  { %v2802_v7 = vadd.f32 %v1576_v6, %v3191_v59  ;;  %v1578_v12 = vpop.f32.mrb[15].mxu0  ;;  %v2272_v11 = vpop.f32.mrb[23].mxu1  ;;  %v1665_v48 = vadd.f32 %v3206_v28, %v1647_v47 }
 0x823   :  { %v2803_v17 = vadd.f32 %v1578_v12, %v3195_v2 }
 0x824   :  { %v1810_v13 = vmul.f32 -1.442695, %v2802_v7 }
 0x825   :  { %v1811_v18 = vmul.f32 -1.442695, %v2803_v17 }
 0x826   :  { %2896 = vpow2.f32 %v1810_v13 }
 0x827   :  { %2898 = vpow2.f32 %v1811_v18 }
 0x830   :  { %v2897_v20 = vpop.eup %2896 }
 0x831   :  { %v1655_v24 = vadd.f32 1.0, %v2897_v20  ;;  %v2899_v25 = vpop.eup %2898 }
 0x832   :  { %v1662_v50 = vadd.f32 1.0, %v2899_v25 }
 0x833   :  { %2900 = vrcp.f32 %v1655_v24 }
 0x834   :  { %2902 = vrcp.f32 %v1662_v50 }
 0x83d   :  { %v2901_v27 = vpop.eup %2900 }
 0x83e   :  { %v1666_v15 = vmul.f32 %v2901_v27, %v1665_v48  ;;  %v2903_v16 = vpop.eup %2902 }
 0x83f   :  { %v1669_v22 = vsub.f32 1.0, %v2903_v16  ;;  %v1671_v31 = vmul.f32 %v2903_v16, %v3442_v29 }
 0x840   :  { %v1667_v59 = vadd.f32 %v1666_v15, %v3197_v4 }
 0x842   :  { %2904 = vtanh.f32 %v1667_v59 }
 0x84c   :  { %v2905_v23 = vpop.eup %2904 }
 0x84d   :  { %v1670_v2 = vmul.f32 %v2905_v23, %v1669_v22 }
 0x84f   :  { %v1672_v33 = vadd.f32 %v1671_v31, %v1670_v2 }
 0x851   :  { %2306 = vmatmul.mubr.f32.vlgmr.msra.gmra.mrb[16].mxu0 %v1672_v33 }
 0x924   :  { %v1762_v42 = vpop.f32.mrb[16].mxu0 }
 0x925   :  { %v1763_v28 = vadd.f32 %v1812_v40, %v1762_v42  ;;  %v2307_v45 = vpop.f32.mrb[17].mxu0 }
 0x927   :  { %v1813_v51 = vmul.f32 -1.442695, %v1763_v28 }
 0x929   :  { %2906 = vpow2.f32 %v1813_v51 }
 0x933   :  { %v2907_v53 = vpop.eup %2906 }
 0x934   :  { %v1769_v4 = vadd.f32 1.0, %v2907_v53 }
 0x936   :  { %2908 = vrcp.f32 %v1769_v4 }
 0x940   :  { %v2909_v56 = vpop.eup %2908 }
 0x941   :  { %1773 = vst.msk [vmem:[%s3521_s7] sm:$0xff] %vm1772_vm2, %v2909_v56 }
 0x942   :  { %1778 = vsyncpa [#allocation3], 1 }

</bundles_post_ra>
